<compile_context>
chip_gen: v7x
topology: tpu7x:2x2x1
jax: 0.10.0
libtpu: 0.0.40
codegen_flags: <defaults>
</compile_context>

<pallas_src>
import functools

import jax
import jax.numpy as jnp
from jax import lax
from jax.experimental import pallas as pl
from jax.experimental.pallas import tpu as pltpu

BN_EPS = 1e-5                    # PyTorch BatchNorm2d default
ACT_DTYPE = jnp.bfloat16         # inter-layer activation storage dtype
_VMEM_TILE_BUDGET = 20 << 20     # estimated per-call tile footprint budget


# ----------------------------------------------------------------------------
# Generic fused matmul kernel:  out = [relu]((X @ W) * scale + bias) [+ res]
# ----------------------------------------------------------------------------
def _fused_mm_kernel(x_ref, w_ref, scale_ref, bias_ref, *rest, relu, has_res):
    if has_res:
        res_ref, out_ref, acc_ref = rest
    else:
        out_ref, acc_ref = rest

    k = pl.program_id(2)

    @pl.when(k == 0)
    def _init():
        acc_ref[...] = jnp.zeros_like(acc_ref)

    # bf16 x bf16 operands, f32 accumulation on the MXU.
    acc_ref[...] += jnp.dot(x_ref[...], w_ref[...],
                            preferred_element_type=jnp.float32)

    @pl.when(k == pl.num_programs(2) - 1)
    def _finalize():
        y = acc_ref[...] * scale_ref[...] + bias_ref[...]
        if relu:
            y = jnp.maximum(y, 0.0)
        if has_res:
            y = y + res_ref[...].astype(jnp.float32)
        out_ref[...] = y.astype(out_ref.dtype)


def _round_up(v, m):
    return (v + m - 1) // m * m


def _vmem_est(tm, tk, tn):
    """Estimated VMEM footprint: double-buffered bf16 X/W/res/out + f32 acc."""
    return (2 * tm * tk * 2 + 2 * tk * tn * 2   # X, W blocks (bf16, x2 buffers)
            + 4 * tm * tn * 2                   # out + residual (bf16, x2 each)
            + tm * tn * 4                       # f32 accumulator scratch
            + 4 * tn * 4)                       # scale / bias


def _pick_tiles(m_pad, k, n_pad):
    """Choose (tm, tk, tn): large K steps (amortize the per-step accumulator
    RMW, helps v5e's single vst slot), >=2 (M,N) blocks when possible so both
    v7x TensorCores get work, everything under a v7x-safe VMEM budget."""
    tn = n_pad
    if n_pad > 512:
        for c in (512, 256, 128):
            if n_pad % c == 0:
                tn = c
                break

    tm_cands = [c for c in (512, 256, 128, 64, 32, 16, 8) if m_pad % c == 0]
    tm = tm_cands[0]
    if (m_pad // tm) * (n_pad // tn) < 2:
        for c in tm_cands:
            if (m_pad // c) * (n_pad // tn) >= 2:
                tm = c
                break

    if k % 128 == 0:
        tk = 128
        for c in (2304, 1152, 1024, 512, 256, 128):
            if k % c == 0 and _vmem_est(tm, c, tn) <= _VMEM_TILE_BUDGET:
                tk = c
                break
    else:
        # Full-extent K block: legal (block == full array dim) and avoids the
        # extra HBM pass that padding K to a multiple of 128 would cost
        # (hits the high-resolution K=576 layers).
        tk = k
    return tm, tk, tn


@functools.lru_cache(maxsize=None)
def _get_fused_matmul_call(m_pad, k_tot, n_pad, tm, tk, tn, relu, has_res,
                           out_dtype_name):
    """Build (and cache) the pallas_call for one (shape, flavor) combination."""
    out_dtype = jnp.dtype(out_dtype_name)
    kernel = functools.partial(_fused_mm_kernel, relu=relu, has_res=has_res)
    in_specs = [
        pl.BlockSpec((tm, tk), lambda i, j, kk: (i, kk)),    # X tile (bf16)
        pl.BlockSpec((tk, tn), lambda i, j, kk: (kk, j)),    # W tile (bf16)
        pl.BlockSpec((1, tn), lambda i, j, kk: (0, j)),      # folded BN scale
        pl.BlockSpec((1, tn), lambda i, j, kk: (0, j)),      # folded BN bias
    ]
    if has_res:
        in_specs.append(pl.BlockSpec((tm, tn), lambda i, j, kk: (i, j)))  # res
    return pl.pallas_call(
        kernel,
        out_shape=jax.ShapeDtypeStruct((m_pad, n_pad), out_dtype),
        grid=(m_pad // tm, n_pad // tn, k_tot // tk),        # reduction axis last
        in_specs=in_specs,
        out_specs=pl.BlockSpec((tm, tn), lambda i, j, kk: (i, j)),
        scratch_shapes=[pltpu.VMEM((tm, tn), jnp.float32)],
        compiler_params=pltpu.CompilerParams(
            dimension_semantics=("parallel", "parallel", "arbitrary"),
            # 32 MiB: >= tile budget + margin; safe on v7x (64 MiB physical),
            # raises v5e's 16 MiB scoped default.
            vmem_limit_bytes=32 << 20,
        ),
    )


def _fused_matmul(x2d, w2d, scale, bias, res2d=None, relu=True,
                  out_dtype=ACT_DTYPE):
    """x2d:(M,K) w2d:(K,N) scale/bias:(N,) res2d:(M,N)|None -> (M,N)."""
    m, k = x2d.shape
    n = w2d.shape[1]

    x2d = x2d.astype(jnp.bfloat16)
    w2d = w2d.astype(jnp.bfloat16)
    if res2d is not None:
        res2d = res2d.astype(jnp.bfloat16)
    scale = scale.astype(jnp.float32)
    bias = bias.astype(jnp.float32)

    # Pad tiny K up to a sublane multiple (only hits the 3-channel stem conv).
    k_pad = _round_up(k, 8)
    if k_pad != k:
        x2d = jnp.pad(x2d, ((0, 0), (0, k_pad - k)))
        w2d = jnp.pad(w2d, ((0, k_pad - k), (0, 0)))

    n_pad = _round_up(n, 128)                 # lane-dense outputs / weights
    if n_pad != n:
        w2d = jnp.pad(w2d, ((0, 0), (0, n_pad - n)))
        scale = jnp.pad(scale, (0, n_pad - n))
        bias = jnp.pad(bias, (0, n_pad - n))
        if res2d is not None:
            res2d = jnp.pad(res2d, ((0, 0), (0, n_pad - n)))

    m_pad = _round_up(m, 8)                   # never fall back to tm == m
    if m_pad != m:
        x2d = jnp.pad(x2d, ((0, m_pad - m), (0, 0)))
        if res2d is not None:
            res2d = jnp.pad(res2d, ((0, m_pad - m), (0, 0)))

    tm, tk, tn = _pick_tiles(m_pad, k_pad, n_pad)

    call = _get_fused_matmul_call(m_pad, k_pad, n_pad, tm, tk, tn, bool(relu),
                                  res2d is not None, jnp.dtype(out_dtype).name)
    args = [x2d, w2d, scale.reshape(1, n_pad), bias.reshape(1, n_pad)]
    if res2d is not None:
        args.append(res2d)
    out = call(*args)
    if m_pad != m:
        out = out[:m]
    if n_pad != n:
        out = out[:, :n]
    return out


# ----------------------------------------------------------------------------
# Conv building blocks (Pallas path)
# ----------------------------------------------------------------------------
def _im2col_3x3(x):
    """(B,H,W,C) -> (B*H*W, 9*C) patches for a 3x3 'same' conv (zero padded)."""
    b, h, w, c = x.shape
    xp = jnp.pad(x, ((0, 0), (1, 1), (1, 1), (0, 0)))
    cols = [xp[:, dy:dy + h, dx:dx + w, :] for dy in range(3) for dx in range(3)]
    return jnp.concatenate(cols, axis=-1).reshape(b * h * w, 9 * c)


def _conv3x3_bn_relu(x, p, res=None):
    """Conv2d(3x3, pad=1, bias) + BatchNorm(eval) + ReLU [+ residual], fused."""
    b, h, w, cin = x.shape
    cout = p["w"].shape[-1]
    cols = _im2col_3x3(x)                          # (M, 9*Cin)  bf16
    wmat = p["w"].reshape(9 * cin, cout)           # HWIO -> (9*Cin, Cout) bf16
    scale = p["gamma"] / jnp.sqrt(p["var"] + BN_EPS)
    bias = p["beta"] + (p["b"] - p["mean"]) * scale
    res2d = None if res is None else res.reshape(b * h * w, cout)
    y = _fused_matmul(cols, wmat, scale, bias, res2d=res2d, relu=True)
    return y.reshape(b, h, w, cout)


def _conv1x1(x, w, b, out_dtype=ACT_DTYPE):
    """Plain Conv2d(1x1) with bias (no BN / no ReLU), same fused kernel."""
    bsz, h, wd, cin = x.shape
    cout = w.shape[1]
    ones = jnp.ones((cout,), jnp.float32)
    y = _fused_matmul(x.reshape(bsz * h * wd, cin), w, ones,
                      b.astype(jnp.float32), relu=False, out_dtype=out_dtype)
    return y.reshape(bsz, h, wd, cout)


def _maxpool2(x):
    b, h, w, c = x.shape
    return x.reshape(b, h // 2, 2, w // 2, 2, c).max(axis=(2, 4))


def _upsample2(x):
    return jnp.repeat(jnp.repeat(x, 2, axis=1), 2, axis=2)   # nearest, scale 2


def _recurrent_block(x, p, t, final_res=None):
    """Recurrent_block: x1=conv(x); x1=conv(x+x1) repeated; the 'x + x1' adds
    and the caller's final residual are fused into the conv epilogues."""
    h = _conv3x3_bn_relu(x, p, res=x)          # = x + conv(x)
    for _ in range(t - 1):
        h = _conv3x3_bn_relu(h, p, res=x)      # = x + conv(x + x1)
    return _conv3x3_bn_relu(h, p, res=final_res)


def _rrcnn_block(x, p, t):
    """RRCNN_block: x0 = Conv1x1(x); x1 = RCNN(x0); return x0 + x1 (fused)."""
    x0 = _conv1x1(x, p["w1x1"], p["b1x1"])
    h = _recurrent_block(x0, p["rec1"], t)
    return _recurrent_block(h, p["rec2"], t, final_res=x0)


def _up_conv(x, p):
    """up_conv: Upsample(x2) -> Conv3x3 + BN + ReLU (fused)."""
    return _conv3x3_bn_relu(_upsample2(x), p)


def r2u_net_forward(x_nchw, params, t=2):
    """R2U_Net forward.  x_nchw: (B, img_ch, H, W) -> (B, output_ch, H, W)."""
    x = jnp.transpose(x_nchw, (0, 2, 3, 1)).astype(ACT_DTYPE)  # NCHW -> NHWC

    x1 = _rrcnn_block(x, params["RRCNN1"], t)
    x2 = _rrcnn_block(_maxpool2(x1), params["RRCNN2"], t)
    x3 = _rrcnn_block(_maxpool2(x2), params["RRCNN3"], t)
    x4 = _rrcnn_block(_maxpool2(x3), params["RRCNN4"], t)
    x5 = _rrcnn_block(_maxpool2(x4), params["RRCNN5"], t)

    d5 = _up_conv(x5, params["Up5"])
    d5 = _rrcnn_block(jnp.concatenate([x4, d5], axis=-1), params["Up_RRCNN5"], t)
    d4 = _up_conv(d5, params["Up4"])
    d4 = _rrcnn_block(jnp.concatenate([x3, d4], axis=-1), params["Up_RRCNN4"], t)
    d3 = _up_conv(d4, params["Up3"])
    d3 = _rrcnn_block(jnp.concatenate([x2, d3], axis=-1), params["Up_RRCNN3"], t)
    d2 = _up_conv(d3, params["Up2"])
    d2 = _rrcnn_block(jnp.concatenate([x1, d2], axis=-1), params["Up_RRCNN2"], t)

    d1 = _conv1x1(d2, params["final"]["w"], params["final"]["b"],
                  out_dtype=jnp.float32)
    return jnp.transpose(d1, (0, 3, 1, 2))                    # NHWC -> NCHW


# ----------------------------------------------------------------------------
# Parameter init (deterministic; BN stored as inference running stats).
# Conv weights are stored bf16 (MXU-native operand dtype); BN stats, biases
# and the folded affine stay f32.
# ----------------------------------------------------------------------------
def _init_convbn(key, cin, cout):
    kw, kb, kg, kbt, km, kv = jax.random.split(key, 6)
    fan_in = 9 * cin
    return {
        "w": ((1.0 / fan_in) ** 0.5
              * jax.random.normal(kw, (3, 3, cin, cout), jnp.float32)
              ).astype(jnp.bfloat16),
        "b": 0.1 * jax.random.normal(kb, (cout,), jnp.float32),
        "gamma": 1.0 + 0.1 * jax.random.normal(kg, (cout,), jnp.float32),
        "beta": 0.1 * jax.random.normal(kbt, (cout,), jnp.float32),
        "mean": 0.1 * jax.random.normal(km, (cout,), jnp.float32),
        "var": 1.0 + 0.1 * jax.random.uniform(kv, (cout,), jnp.float32),
    }


def _init_rrcnn(key, cin, cout):
    k1, k2, k3, k4 = jax.random.split(key, 4)
    return {
        "w1x1": ((1.0 / cin) ** 0.5
                 * jax.random.normal(k1, (cin, cout), jnp.float32)
                 ).astype(jnp.bfloat16),
        "b1x1": 0.1 * jax.random.normal(k2, (cout,), jnp.float32),
        "rec1": _init_convbn(k3, cout, cout),
        "rec2": _init_convbn(k4, cout, cout),
    }


def init_params(key, img_ch=3, output_ch=1):
    rrcnn_defs = [("RRCNN1", img_ch, 64), ("RRCNN2", 64, 128), ("RRCNN3", 128, 256),
                  ("RRCNN4", 256, 512), ("RRCNN5", 512, 1024),
                  ("Up_RRCNN5", 1024, 512), ("Up_RRCNN4", 512, 256),
                  ("Up_RRCNN3", 256, 128), ("Up_RRCNN2", 128, 64)]
    up_defs = [("Up5", 1024, 512), ("Up4", 512, 256), ("Up3", 256, 128), ("Up2", 128, 64)]
    keys = jax.random.split(key, len(rrcnn_defs) + len(up_defs) + 1)
    params = {}
    i = 0
    for name, cin, cout in rrcnn_defs:
        params[name] = _init_rrcnn(keys[i], cin, cout); i += 1
    for name, cin, cout in up_defs:
        params[name] = _init_convbn(keys[i], cin, cout); i += 1
    kf1, kf2 = jax.random.split(keys[i])
    params["final"] = {
        "w": ((1.0 / 64) ** 0.5
              * jax.random.normal(kf1, (64, output_ch), jnp.float32)
              ).astype(jnp.bfloat16),
        "b": 0.1 * jax.random.normal(kf2, (output_ch,), jnp.float32),
    }
    return params


# ----------------------------------------------------------------------------
# Pure-XLA reference (independent implementation for validation; f32 activations
# throughout, weights upcast from the shared bf16 parameters).
# ----------------------------------------------------------------------------
def _ref_convbn_relu(x, p):
    y = lax.conv_general_dilated(x, p["w"].astype(jnp.float32),
                                 window_strides=(1, 1),
                                 padding=((1, 1), (1, 1)),
                                 dimension_numbers=("NHWC", "HWIO", "NHWC"),
                                 precision=lax.Precision.HIGHEST)
    y = y + p["b"]
    y = (y - p["mean"]) / jnp.sqrt(p["var"] + BN_EPS) * p["gamma"] + p["beta"]
    return jnp.maximum(y, 0.0)


def _ref_conv1x1(x, w, b):
    return jnp.einsum("bhwc,cd->bhwd", x, w.astype(jnp.float32),
                      precision=lax.Precision.HIGHEST) + b


def _ref_recurrent(x, p, t):
    x1 = x
    for i in range(t):
        if i == 0:
            x1 = _ref_convbn_relu(x, p)
        x1 = _ref_convbn_relu(x + x1, p)
    return x1


def _ref_rrcnn(x, p, t):
    x0 = _ref_conv1x1(x, p["w1x1"], p["b1x1"])
    x1 = _ref_recurrent(x0, p["rec1"], t)
    x1 = _ref_recurrent(x1, p["rec2"], t)
    return x0 + x1


def _reference_forward(x_nchw, params, t=2):
    x = jnp.transpose(x_nchw, (0, 2, 3, 1))
    x1 = _ref_rrcnn(x, params["RRCNN1"], t)
    x2 = _ref_rrcnn(_maxpool2(x1), params["RRCNN2"], t)
    x3 = _ref_rrcnn(_maxpool2(x2), params["RRCNN3"], t)
    x4 = _ref_rrcnn(_maxpool2(x3), params["RRCNN4"], t)
    x5 = _ref_rrcnn(_maxpool2(x4), params["RRCNN5"], t)
    d5 = _ref_convbn_relu(_upsample2(x5), params["Up5"])
    d5 = _ref_rrcnn(jnp.concatenate([x4, d5], axis=-1), params["Up_RRCNN5"], t)
    d4 = _ref_convbn_relu(_upsample2(d5), params["Up4"])
    d4 = _ref_rrcnn(jnp.concatenate([x3, d4], axis=-1), params["Up_RRCNN4"], t)
    d3 = _ref_convbn_relu(_upsample2(d4), params["Up3"])
    d3 = _ref_rrcnn(jnp.concatenate([x2, d3], axis=-1), params["Up_RRCNN3"], t)
    d2 = _ref_convbn_relu(_upsample2(d3), params["Up2"])
    d2 = _ref_rrcnn(jnp.concatenate([x1, d2], axis=-1), params["Up_RRCNN2"], t)
    d1 = _ref_conv1x1(d2, params["final"]["w"], params["final"]["b"])
    return jnp.transpose(d1, (0, 3, 1, 2))


# ----------------------------------------------------------------------------
if __name__ == "__main__":
    B, C, H, W = 2, 3, 16, 16        # H, W must be multiples of 16 (4 maxpools)
    key = jax.random.PRNGKey(0)
    kp, kx, kt = jax.random.split(key, 3)
    params = init_params(kp, img_ch=C, output_ch=1)
    x = jax.random.normal(kx, (B, C, H, W), jnp.float32)

    # (a) single fused conv3x3 + BN + ReLU kernel vs XLA reference, on identical
    #     (bf16-quantized) inputs/weights: isolates tap-ordering / BN-fold bugs
    #     from accumulated rounding.  Remaining error is the bf16 output store
    #     + MXU accumulation order (~1e-3), so this check is tight.
    xt = jax.random.normal(kt, (B, H, W, 64), jnp.float32).astype(jnp.bfloat16)
    p0 = params["RRCNN1"]["rec1"]
    y_pal = jax.block_until_ready(_conv3x3_bn_relu(xt, p0)).astype(jnp.float32)
    y_ref = _ref_convbn_relu(xt.astype(jnp.float32), p0)
    e1 = float(jnp.max(jnp.abs(y_pal - y_ref)) / (jnp.max(jnp.abs(y_ref)) + 1e-6))
    assert e1 < 2e-2, f"single-layer mismatch: {e1}"

    # (b) full R2U_Net forward (Pallas) vs pure-XLA f32 reference.
    fwd = jax.jit(functools.partial(r2u_net_forward, t=2))
    out = jax.block_until_ready(fwd(x, params))
    assert out.shape == (B, 1, H, W), out.shape
    assert bool(jnp.all(jnp.isfinite(out)))

    ref = jax.jit(functools.partial(_reference_forward, t=2))(x, params)
    rel = float(jnp.linalg.norm(out - ref) / (jnp.linalg.norm(ref) + 1e-6))
    # Tolerance rationale: the Pallas path deliberately stores inter-layer
    # activations in bf16 and feeds the MXU bf16 operands (f32 accumulation).
    # ~68 sequential convs x ~2e-3 bf16 store rounding -> expected rel-L2 of
    # a few percent; 0.15 leaves margin while still catching structural bugs
    # (those are separately caught by the tight single-layer check above).
    assert rel < 0.15, f"network mismatch (rel L2): {rel}"

    print("KERNEL_OK")
</pallas_src>

<mosaic_0001>
module attributes {stable_mosaic.version = 11 : i64} {
  func.func @_fused_mm_kernel(%arg0: i32, %arg1: i32, %arg2: i32, %arg3: memref<256x576xbf16, #tpu.memory_space<vmem>>, %arg4: memref<576x128xbf16, #tpu.memory_space<vmem>>, %arg5: memref<1x128xf32, #tpu.memory_space<vmem>>, %arg6: memref<1x128xf32, #tpu.memory_space<vmem>>, %arg7: memref<256x128xbf16, #tpu.memory_space<vmem>>, %arg8: memref<256x128xf32, #tpu.memory_space<vmem>>) attributes {dimension_semantics = [#tpu.dimension_semantics<parallel>, #tpu.dimension_semantics<parallel>, #tpu.dimension_semantics<arbitrary>], iteration_bounds = array<i64: 2, 1, 1>, scalar_prefetch = 0 : i64, scratch_operands = 1 : i64, tpu.core_type = #tpu.core_type<tc>, window_params = [{transform_indices = @transform_0, window_bounds = array<i64: 256, 576>}, {transform_indices = @transform_1, window_bounds = array<i64: 576, 128>}, {transform_indices = @transform_2, window_bounds = array<i64: 1, 128>}, {transform_indices = @transform_3, window_bounds = array<i64: 1, 128>}, {transform_indices = @transform_4, window_bounds = array<i64: 256, 128>}]} {
    %c0_i32 = arith.constant 0 : i32
    %0 = arith.cmpi eq, %arg2, %c0_i32 : i32
    %1 = arith.extui %0 : i1 to i32
    %c0_i32_0 = arith.constant 0 : i32
    %2 = arith.cmpi ne, %1, %c0_i32_0 : i32
    scf.if %2 {
      %cst_10 = arith.constant 0.000000e+00 : f32
      %12 = vector.broadcast %cst_10 : f32 to vector<256x128xf32>
      %c0_11 = arith.constant 0 : index
      %c0_12 = arith.constant 0 : index
      %13 = vector.load %arg8[%c0_11, %c0_12] : memref<256x128xf32, #tpu.memory_space<vmem>>, vector<256x128xf32>
      tpu.vector_store %arg8[%c0_11, %c0_12], %12 {strides = array<i32>} : memref<256x128xf32, #tpu.memory_space<vmem>>, vector<256x128xf32>,
    } else {
    }
    %c0 = arith.constant 0 : index
    %c0_1 = arith.constant 0 : index
    %3 = vector.load %arg8[%c0, %c0_1] : memref<256x128xf32, #tpu.memory_space<vmem>>, vector<256x128xf32>
    %c0_2 = arith.constant 0 : index
    %c0_3 = arith.constant 0 : index
    %4 = vector.load %arg3[%c0_2, %c0_3] : memref<256x576xbf16, #tpu.memory_space<vmem>>, vector<256x576xbf16>
    %c0_4 = arith.constant 0 : index
    %c0_5 = arith.constant 0 : index
    %5 = vector.load %arg4[%c0_4, %c0_5] : memref<576x128xbf16, #tpu.memory_space<vmem>>, vector<576x128xbf16>
    %cst = arith.constant dense<0.000000e+00> : vector<256x128xf32>
    %6 = tpu.matmul %4, %5, %cst {dimension_numbers = #tpu.dot_dimension_numbers<[1], [0], [0], [1], [0, 0, 1, 1], [], []>} : vector<256x576xbf16>, vector<576x128xbf16>, vector<256x128xf32> -> vector<256x128xf32>
    %7 = arith.addf %3, %6 : vector<256x128xf32>
    %c0_6 = arith.constant 0 : index
    %c0_7 = arith.constant 0 : index
    %8 = vector.load %arg8[%c0_6, %c0_7] : memref<256x128xf32, #tpu.memory_space<vmem>>, vector<256x128xf32>
    tpu.vector_store %arg8[%c0_6, %c0_7], %7 {strides = array<i32>} : memref<256x128xf32, #tpu.memory_space<vmem>>, vector<256x128xf32>,
    %c0_i32_8 = arith.constant 0 : i32
    %9 = arith.cmpi eq, %arg2, %c0_i32_8 : i32
    %10 = arith.extui %9 : i1 to i32
    %c0_i32_9 = arith.constant 0 : i32
    %11 = arith.cmpi ne, %10, %c0_i32_9 : i32
    scf.if %11 {
      %c0_10 = arith.constant 0 : index
      %c0_11 = arith.constant 0 : index
      %12 = vector.load %arg8[%c0_10, %c0_11] : memref<256x128xf32, #tpu.memory_space<vmem>>, vector<256x128xf32>
      %c0_12 = arith.constant 0 : index
      %c0_13 = arith.constant 0 : index
      %13 = vector.load %arg5[%c0_12, %c0_13] : memref<1x128xf32, #tpu.memory_space<vmem>>, vector<1x128xf32>
      %14 = vector.broadcast %13 : vector<1x128xf32> to vector<256x128xf32>
      %15 = arith.mulf %12, %14 : vector<256x128xf32>
      %c0_14 = arith.constant 0 : index
      %c0_15 = arith.constant 0 : index
      %16 = vector.load %arg6[%c0_14, %c0_15] : memref<1x128xf32, #tpu.memory_space<vmem>>, vector<1x128xf32>
      %17 = vector.broadcast %16 : vector<1x128xf32> to vector<256x128xf32>
      %18 = arith.addf %15, %17 : vector<256x128xf32>
      %cst_16 = arith.constant 0.000000e+00 : f32
      %19 = vector.broadcast %cst_16 : f32 to vector<256x128xf32>
      %20 = arith.maximumf %18, %19 : vector<256x128xf32>
      %21 = arith.truncf %20 : vector<256x128xf32> to vector<256x128xbf16>
      %c0_17 = arith.constant 0 : index
      %c0_18 = arith.constant 0 : index
      %22 = vector.load %arg7[%c0_17, %c0_18] : memref<256x128xbf16, #tpu.memory_space<vmem>>, vector<256x128xbf16>
      tpu.vector_store %arg7[%c0_17, %c0_18], %21 {strides = array<i32>} : memref<256x128xbf16, #tpu.memory_space<vmem>>, vector<256x128xbf16>,
    } else {
    }
    return
  }
  func.func @transform_0(%arg0: i32, %arg1: i32, %arg2: i32) -> (i32, i32) {
    %c0_i32 = arith.constant 0 : i32
    return %arg0, %arg2 : i32, i32
  }
  func.func @transform_1(%arg0: i32, %arg1: i32, %arg2: i32) -> (i32, i32) {
    %c0_i32 = arith.constant 0 : i32
    return %arg2, %arg1 : i32, i32
  }
  func.func @transform_2(%arg0: i32, %arg1: i32, %arg2: i32) -> (i32, i32) {
    %c0_i32 = arith.constant 0 : i32
    %c0_i32_0 = arith.constant 0 : i32
    return %c0_i32, %arg1 : i32, i32
  }
  func.func @transform_3(%arg0: i32, %arg1: i32, %arg2: i32) -> (i32, i32) {
    %c0_i32 = arith.constant 0 : i32
    %c0_i32_0 = arith.constant 0 : i32
    return %c0_i32, %arg1 : i32, i32
  }
  func.func @transform_4(%arg0: i32, %arg1: i32, %arg2: i32) -> (i32, i32) {
    %c0_i32 = arith.constant 0 : i32
    return %arg0, %arg1 : i32, i32
  }
}

</mosaic_0001>

<bundles_post_ra>
// kernel: tpu_custom_call.1
= control target key start
LH: loop header
LB: loop body
LE: loop exit
PB: predicated region body
PF: predicated region fallthrough
CT: control target
= control target key end

     0   :  { %9 = vsyncpa [#allocation4], 0  ;;  %s3647_s0 = inlined_call_operand.vmem [shape: bf16[512,576], index: 0, kind: input, shape index: {}]   ;;  %s3648_s1 = inlined_call_operand.vmem [shape: bf16[576,128], index: 1, kind: input, shape index: {}]   ;;  %s3649_s2 = inlined_call_operand.vmem [shape: f32[1,128], index: 2, kind: input, shape index: {}]   ;;  %s3650_s3 = inlined_call_operand.vmem [shape: f32[1,128], index: 3, kind: input, shape index: {}]   ;;  %s3651_s4 = inlined_call_operand.hbm [shape: bf16[512,128], index: 4, kind: output, shape index: {}]  }
   0x1   :  { %11 = vsyncpa [#allocation4 + $0x1], 0  ;;  %s3116_s15 = smov 0   ;;  %s3118_s16 = smov 0  }
   0x2   :  { %s3120_s17 = smov 0   ;;  %s3122_s18 = smov 0  }
   0x3   :  { %s3124_s19 = smov 0   ;;  %s3126_s20 = smov 0  }
   0x4 LB: > { %s2192_s21 = sadd.s32 4294967295, %s3086_s20   ;;  %s2193_s22 = sadd.s32 4294967294, %s3086_s20   ;;  %s3086_s20 = sphi %s3126_s20, %s17_s20   ;;  %s3082_s19 = sphi %s3124_s19, %s3658_s19   ;;  %s3078_s18 = sphi %s3122_s18, %s3657_s18   ;;  %s3074_s17 = sphi %s3120_s17, %s3656_s17   ;;  %s3070_s16 = sphi %s3118_s16, %s3655_s16   ;;  %s3066_s15 = sphi %s3116_s15, %s3654_s15  }
   0x5   : > { %s36_s23 = sadd.s32 1, %s3082_s19  ;;  %s153_s24 = sadd.s32 1, %s3074_s17 }
   0x6   : > { %p38_p0 = scmp.ge.s32.totalorder %s36_s23, 2  ;;  %p163_p1 = scmp.ne.s32.totalorder %s3074_s17, %s3070_s16 }
   0x7   : > { %p164_p2 = scmp.eq.s32.totalorder %s2192_s21, 1  ;;  %p169_p3 = scmp.ne.s32.totalorder %s3070_s16, %s3066_s15 }
   0x8   : > { %s3660_s23 = smov (%p38_p0, %s36_s23), 0  ;;  %p170_p5 = scmp.eq.s32.totalorder %s2193_s22, 1 }
   0x9   : > { %p3156_p4 = por %p164_p2, %p163_p1  ;;  %s148_s26 = ssub.s32 %s3082_s19, %s3660_s23 }
   0xa   : > { %p2199_p6 = scmp.ge.s32.totalorder %s3086_s20, 1  ;;  %p151_p7 = scmp.eq.s32.totalorder %s148_s26, 0 }
   0xb   : > { %p3163_p8 = por %p170_p5, %p169_p3  ;;  %p227_p9 = scmp.lt.s32.totalorder %s3086_s20, 3 }
   0xc   : > { %s3169_s28 = scalar_select %p151_p7, %s3074_s17, %s153_s24  }
   0xd   : > { %p228_p10 = pnand %p2199_p6, %p227_p9 }
   0xe   : > { %v2860_v0 = vld [vmem:[%s3648_s1 + $0x40] sm:$0xff] (!%p228_p10)   ;;  %s2201_s5 = sshll.u32 (!%p228_p10), %s3078_s18, 5  ;;  %v2862_v2 = vld [vmem:[%s3648_s1 + $0x48] sm:$0xff] (!%p228_p10)   ;;  %v2864_v4 = vld [vmem:[%s3648_s1 + $0x50] sm:$0xff] (!%p228_p10)   ;;  %vm1153_vm0 = vcmask (!%p228_p10), 523264   ;;  %s269_s7 = sand.u32 (!%p228_p10), 1, %s3070_s16  }
   0xf   : > { %231 = sbr.rel (%p228_p10) target bundleno = 443 (0x1bb), region = 36  ;;  %v2861_v1 = vld [vmem:[%s3648_s1] sm:$0xff] (!%p228_p10)   ;;  %2502 = vmatprep.subr.bf16.mxu0 (!%p228_p10), %v2860_v0  ;;  %2786 = vmatprep.subr.bf16.mxu1 (!%p228_p10), %v2860_v0  ;;  %p274_p11 = scmp.lt.s32.totalorder (!%p228_p10), %s2201_s5, 63  ;;  %v2863_v3 = vld [vmem:[%s3648_s1 + $0x8] sm:$0xff] (!%p228_p10)   ;;  %v2865_v5 = vld [vmem:[%s3648_s1 + $0x10] sm:$0xff] (!%p228_p10)  }
  0x10   : > { %2503 = vmatpush3.bf16.msra.mxu0 (!%p228_p10), %v2861_v1  ;;  %2794 = vmatpush3.bf16.msra.mxu1 (!%p228_p10), %v2861_v1  ;;  %v2866_v6 = vld [vmem:[%s3648_s1 + $0x58] sm:$0xff] (!%p228_p10)   ;;  %v2868_v8 = vld [vmem:[%s3648_s1 + $0x60] sm:$0xff] (!%p228_p10)   ;;  %v2870_v10 = vld [vmem:[%s3648_s1 + $0x68] sm:$0xff] (!%p228_p10)   ;;  %s2200_s8 = sshll.u32 (!%p228_p10), %s269_s7, 7  ;;  %s3601_s21 = scalar_lea.sflag (!%p228_p10), [#allocation4], %s269_s7 }
  0x11   : > { %2504 = vmatprep.subr.bf16.mxu0 (!%p228_p10), %v2862_v2  ;;  %2787 = vmatprep.subr.bf16.mxu1 (!%p228_p10), %v2862_v2  ;;  %v2867_v7 = vld [vmem:[%s3648_s1 + $0x18] sm:$0xff] (!%p228_p10)   ;;  %v2869_v9 = vld [vmem:[%s3648_s1 + $0x20] sm:$0xff] (!%p228_p10)   ;;  %v2871_v13 = vld [vmem:[%s3648_s1 + $0x28] sm:$0xff] (!%p228_p10)   ;;  %s3482_s9 = scalar_lea.vmem (!%p228_p10), [#allocation3], %s2200_s8  ;;  %s3088_s22 = smov (!%p228_p10), [#allocation3]  }
  0x12   : > { %v2872_v14 = vld [vmem:[%s3648_s1 + $0x70] sm:$0xff] (!%p228_p10)   ;;  %v2874_v16 = vld [vmem:[%s3648_s1 + $0x78] sm:$0xff] (!%p228_p10)   ;;  %v2882_v18 = vld [vmem:[%s3648_s1 + $0xc0] sm:$0xff] (!%p228_p10)   ;;  %s2069_s11 = sshll.u32 (!%p228_p10), %s3482_s9, 4  ;;  %s3012_s24 = sshll.u32 (!%p228_p10), %s3088_s22, 4  ;;  %s3596_s11 = int_to_ptr.vmem [resolvable:$true] %s2069_s11  ;;  %s3013_s24 = int_to_ptr.vmem [resolvable:$false] %s3012_s24 }
  0x13   : > { %v2873_v15 = vld [vmem:[%s3648_s1 + $0x30] sm:$0xff] (!%p228_p10)   ;;  %v2875_v17 = vld [vmem:[%s3648_s1 + $0x38] sm:$0xff] (!%p228_p10)   ;;  %v2885_v19 = vld [vmem:[%s3648_s1 + $0x100] sm:$0xff] (!%p228_p10)   ;;  %p3015_p1 = scmp.lt.s32.totalorder (!%p228_p10), %s3596_s11, %s3013_s24 }
  0x14   : > { %2505 = vmatpush3.bf16.msra.mxu0 (!%p228_p10), %v2863_v3  ;;  %2795 = vmatpush3.bf16.msra.mxu1 (!%p228_p10), %v2863_v3  ;;  %v2883_v22 = vld [vmem:[%s3648_s1 + $0x80] sm:$0xff] (!%p228_p10)   ;;  %v2884_v23 = vld [vmem:[%s3648_s1 + $0xc8] sm:$0xff] (!%p228_p10)   ;;  %v2893_v28 = vld [vmem:[%s3648_s1 + $0xd0] sm:$0xff] (!%p228_p10)  }
  0x15   : > { %2506 = vmatprep.subr.bf16.mxu0 (!%p228_p10), %v2864_v4  ;;  %2788 = vmatprep.subr.bf16.mxu1 (!%p228_p10), %v2864_v4  ;;  %v2886_v26 = vld [vmem:[%s3648_s1 + $0x88] sm:$0xff] (!%p228_p10)   ;;  %v2894_v30 = vld [vmem:[%s3648_s1 + $0x90] sm:$0xff] (!%p228_p10)   ;;  %v2895_v31 = vld [vmem:[%s3648_s1 + $0xd8] sm:$0xff] (!%p228_p10)  }
  0x16   : > { %s3662_s5 = smov (!%p274_p11, %s2201_s5), 63  ;;  %v2896_v34 = vld [vmem:[%s3648_s1 + $0x98] sm:$0xff]   ;;  %v2916_v35 = vld [vmem:[%s3648_s1 + $0x108] sm:$0xff]   ;;  %v2903_v37 = vld [vmem:[%s3648_s1 + $0xe0] sm:$0xff]  }
  0x17   : > { %s2802_s26 = smul.u32 20, %s3662_s5  ;;  %v2904_v39 = vld [vmem:[%s3648_s1 + $0xa0] sm:$0xff]   ;;  %v2905_v40 = vld [vmem:[%s3648_s1 + $0xe8] sm:$0xff]   ;;  %v2913_v46 = vld [vmem:[%s3648_s1 + $0xf0] sm:$0xff]   ;;  %s2406_s5 = sshll.u32 %s3078_s18, 11 }
  0x18   : > { %2507 = vmatpush3.bf16.msra.mxu0 %v2865_v5  ;;  %2796 = vmatpush3.bf16.msra.mxu1 %v2865_v5  ;;  %v2906_v43 = vld [vmem:[%s3648_s1 + $0xa8] sm:$0xff]   ;;  %v2936_v47 = vld [vmem:[%s3648_s1 + $0x110] sm:$0xff]   ;;  %v2915_v49 = vld [vmem:[%s3648_s1 + $0xf8] sm:$0xff]   ;;  %s3594_s14 = scalar_lea.hbm %s3651_s4, %s2406_s5  ;;  %s3008_s18 = scalar_lea.vmem %s3596_s11, 2048 }
  0x19   : > { %2508 = vmatprep.subr.bf16.mxu0 %v2866_v6  ;;  %2789 = vmatprep.subr.bf16.mxu1 %v2866_v6  ;;  %s3202_s10 = scalar_lea.vmem %s3647_s0, %s2802_s26  ;;  %v2914_v48 = vld [vmem:[%s3648_s1 + $0xb0] sm:$0xff]   ;;  %v2917_v52 = vld [vmem:[%s3648_s1 + $0xb8] sm:$0xff]   ;;  %p3009_p12 = scmp.ne.s32.totalorder %s3596_s11, %s3008_s18 }
  0x1a   : > { %v2878_v11 = vld [vmem:[%s3202_s10 + $0x4] ss:$20 sps:$4 sm:$0xff]   ;;  %v2876_v20 = vld [vmem:[%s3202_s10] ss:$20 sps:$4 sm:$0xff]   ;;  %v2891_v27 = vld [vmem:[%s3202_s10 + $0x28] ss:$20 sps:$4 sm:$0xff]  }
  0x1b   : > { %v2881_v12 = vld [vmem:[%s3202_s10 + $0x1e4] ss:$20 sps:$4 sm:$0xff]   ;;  %1234 = vmatprep.mubr.bf16.mxu0 %v2878_v11  ;;  %v2879_v21 = vld [vmem:[%s3202_s10 + $0x1e0] ss:$20 sps:$4 sm:$0xff]   ;;  %v2892_v29 = vld [vmem:[%s3202_s10 + $0x208] ss:$20 sps:$4 sm:$0xff]   ;;  %p3010_p13 = pnand %p3009_p12, %p3156_p4 }
  0x1c   : > { %2509 = vmatpush3.bf16.msra.mxu0 %v2867_v7  ;;  %2797 = vmatpush3.bf16.msra.mxu1 %v2867_v7  ;;  %v2887_v24 = vld [vmem:[%s3202_s10 + $0x2c] ss:$20 sps:$4 sm:$0xff]   ;;  %v2897_v32 = vld [vmem:[%s3202_s10 + $0x54] ss:$20 sps:$4 sm:$0xff]   ;;  %v2901_v36 = vld [vmem:[%s3202_s10 + $0x50] ss:$20 sps:$4 sm:$0xff]  }
  0x1d   : > { %2510 = vmatprep.subr.bf16.mxu0 %v2868_v8  ;;  %2790 = vmatprep.subr.bf16.mxu1 %v2868_v8  ;;  %v2889_v25 = vld [vmem:[%s3202_s10 + $0x20c] ss:$20 sps:$4 sm:$0xff]   ;;  %v2899_v33 = vld [vmem:[%s3202_s10 + $0x234] ss:$20 sps:$4 sm:$0xff]   ;;  %v2902_v38 = vld [vmem:[%s3202_s10 + $0x230] ss:$20 sps:$4 sm:$0xff]   ;;  %p3011_p0 = pneg %p3010_p13 }
  0x1e   : > { %1330 = vmatprep.mubr.bf16.mxu1 %v2881_v12  ;;  %v2907_v41 = vld [vmem:[%s3202_s10 + $0x7c] ss:$20 sps:$4 sm:$0xff]   ;;  %v2911_v44 = vld [vmem:[%s3202_s10 + $0x78] ss:$20 sps:$4 sm:$0xff]   ;;  %v2923_v54 = vld [vmem:[%s3202_s10 + $0xa0] ss:$20 sps:$4 sm:$0xff]  }
  0x1f   : > { %v2909_v42 = vld [vmem:[%s3202_s10 + $0x25c] ss:$20 sps:$4 sm:$0xff]   ;;  %v2912_v45 = vld [vmem:[%s3202_s10 + $0x258] ss:$20 sps:$4 sm:$0xff]   ;;  %v2926_v57 = vld [vmem:[%s3202_s10 + $0x34] ss:$20 sps:$4 sm:$0xff]  }
  0x20   : > { %2511 = vmatpush3.bf16.msra.mxu0 %v2869_v9  ;;  %2798 = vmatpush3.bf16.msra.mxu1 %v2869_v9  ;;  %v2918_v50 = vld [vmem:[%s3202_s10 + $0xa4] ss:$20 sps:$4 sm:$0xff]   ;;  %v2922_v51 = vld [vmem:[%s3202_s10 + $0xc] ss:$20 sps:$4 sm:$0xff]   ;;  %v2920_v53 = vld [vmem:[%s3202_s10 + $0x8] ss:$20 sps:$4 sm:$0xff]  }
  0x21   : > { %2512 = vmatprep.subr.bf16.mxu0 %v2870_v10  ;;  %2791 = vmatprep.subr.bf16.mxu1 %v2870_v10  ;;  %v2924_v55 = vld [vmem:[%s3202_s10 + $0xcc] ss:$20 sps:$4 sm:$0xff]   ;;  %v2955_v56 = vld [vmem:[%s3648_s1 + $0x118] sm:$0xff]   ;;  %v2929_v59 = vld [vmem:[%s3202_s10 + $0x30] ss:$20 sps:$4 sm:$0xff]   ;;  %s3014_s26 = scalar_lea.vmem %s3013_s24, 4096 }
  0x22   : > { %v2928_v58 = vld [vmem:[%s3202_s10 + $0xc8] ss:$20 sps:$4 sm:$0xff]   ;;  %v2934_v62 = vld [vmem:[%s3202_s10 + $0xf0] ss:$20 sps:$4 sm:$0xff]   ;;  %v2935_v63 = vld [vmem:[%s3202_s10 + $0x58] ss:$20 sps:$4 sm:$0xff]   ;;  %p3016_p2 = scmp.lt.s32.totalorder %s3014_s26, %s3008_s18 }
  0x23   : > { %v2930_v60 = vld [vmem:[%s3202_s10 + $0xf4] ss:$20 sps:$4 sm:$0xff]   ;;  %v2932_v61 = vld [vmem:[%s3202_s10 + $0x5c] ss:$20 sps:$4 sm:$0xff]   ;;  %v2939_v1 = vld [vmem:[%s3202_s10 + $0x84] ss:$20 sps:$4 sm:$0xff]  }
  0x24   : > { %2513 = vmatpush3.bf16.msra.mxu0 %v2871_v13  ;;  %2799 = vmatpush3.bf16.msra.mxu1 %v2871_v13  ;;  %v2937_v0 = vld [vmem:[%s3202_s10 + $0x11c] ss:$20 sps:$4 sm:$0xff]   ;;  %v2941_v2 = vld [vmem:[%s3202_s10 + $0x118] ss:$20 sps:$4 sm:$0xff]   ;;  %v2942_v3 = vld [vmem:[%s3202_s10 + $0x80] ss:$20 sps:$4 sm:$0xff]   ;;  %p3017_p3 = por %p3016_p2, %p3015_p1 }
  0x25   : > { %2514 = vmatprep.subr.bf16.mxu0 %v2872_v14  ;;  %2792 = vmatprep.subr.bf16.mxu1 %v2872_v14  ;;  %v2943_v4 = vld [vmem:[%s3202_s10 + $0x144] ss:$20 sps:$4 sm:$0xff]   ;;  %v2945_v5 = vld [vmem:[%s3202_s10 + $0xac] ss:$20 sps:$4 sm:$0xff]   ;;  %v2948_v7 = vld [vmem:[%s3202_s10 + $0xa8] ss:$20 sps:$4 sm:$0xff]  }
  0x26   : > { %v2947_v6 = vld [vmem:[%s3202_s10 + $0x140] ss:$20 sps:$4 sm:$0xff]   ;;  %v2953_v10 = vld [vmem:[%s3202_s10 + $0x168] ss:$20 sps:$4 sm:$0xff]   ;;  %v2954_v11 = vld [vmem:[%s3202_s10 + $0xd0] ss:$20 sps:$4 sm:$0xff]   ;;  %p3018_p5 = pnand %p3017_p3, %p3011_p0 }
  0x27   : > { %v2949_v8 = vld [vmem:[%s3202_s10 + $0x16c] ss:$20 sps:$4 sm:$0xff]   ;;  %v2951_v9 = vld [vmem:[%s3202_s10 + $0xd4] ss:$20 sps:$4 sm:$0xff]   ;;  %v2958_v13 = vld [vmem:[%s3202_s10 + $0xfc] ss:$20 sps:$4 sm:$0xff]  }
  0x28   : > { %2515 = vmatpush3.bf16.msra.mxu0 %v2873_v15  ;;  %2800 = vmatpush3.bf16.msra.mxu1 %v2873_v15  ;;  %v2956_v12 = vld [vmem:[%s3202_s10 + $0x194] ss:$20 sps:$4 sm:$0xff]   ;;  %v2960_v14 = vld [vmem:[%s3202_s10 + $0x190] ss:$20 sps:$4 sm:$0xff]   ;;  %v2961_v15 = vld [vmem:[%s3202_s10 + $0xf8] ss:$20 sps:$4 sm:$0xff]  }
  0x29   : > { %2516 = vmatprep.subr.bf16.mxu0 %v2874_v16  ;;  %2793 = vmatprep.subr.bf16.mxu1 %v2874_v16  ;;  %v2962_v16 = vld [vmem:[%s3202_s10 + $0x1bc] ss:$20 sps:$4 sm:$0xff]  }
  0x2c   : > { %2517 = vmatpush3.bf16.msra.mxu0 %v2875_v17  ;;  %2801 = vmatpush3.bf16.msra.mxu1 %v2875_v17  ;;  %v2964_v17 = vld [vmem:[%s3202_s10 + $0x124] ss:$20 sps:$4 sm:$0xff]  }
  0x2d   : > { %2614 = vmatprep.subr.bf16.mxu1 %v2882_v18  ;;  %2746 = vmatprep.subr.bf16.mxu0 %v2885_v19  ;;  %v2966_v18 = vld [vmem:[%s3202_s10 + $0x1b8] ss:$20 sps:$4 sm:$0xff]  }
  0x2f   : > { %1235 = vmatmul.mubr.bf16.vlgmr.msra.gmra.mrb[0].mxu0 %v2876_v20  ;;  %1331 = vmatmul.mubr.bf16.vlgmr.msra.gmra.mrb[0].mxu1 %v2879_v21  ;;  %v2968_v20 = vld [vmem:[%s3202_s10 + $0x14c] ss:$20 sps:$4 sm:$0xff]   ;;  %v2970_v21 = vld [vmem:[%s3202_s10 + $0x10] ss:$20 sps:$4 sm:$0xff]  }
  0x30   : > { %2615 = vmatpush3.bf16.msra.mxu1 %v2883_v22  ;;  %2747 = vmatpush3.bf16.msra.mxu0 %v2885_v19  ;;  %v2967_v19 = vld [vmem:[%s3202_s10 + $0x120] ss:$20 sps:$4 sm:$0xff]   ;;  %v2971_v22 = vld [vmem:[%s3202_s10 + $0x148] ss:$20 sps:$4 sm:$0xff]  }
  0x31   : > { %2616 = vmatprep.subr.bf16.mxu1 %v2884_v23  ;;  %1242 = vmatprep.mubr.bf16.mxu0 %v2887_v24  ;;  %v2972_v23 = vld [vmem:[%s3202_s10 + $0x38] ss:$20 sps:$4 sm:$0xff]   ;;  %v2973_v24 = vld [vmem:[%s3202_s10 + $0x174] ss:$20 sps:$4 sm:$0xff]  }
  0x32   : > { %1338 = vmatprep.mubr.bf16.mxu1 %v2889_v25  ;;  %2748 = vmatprep.subr.bf16.mxu0 %v2916_v35  ;;  %v2975_v25 = vld [vmem:[%s3202_s10 + $0x60] ss:$20 sps:$4 sm:$0xff]  }
  0x34   : > { %2617 = vmatpush3.bf16.msra.mxu1 %v2886_v26  ;;  %2749 = vmatpush3.bf16.msra.mxu0 %v2916_v35  ;;  %v2976_v26 = vld [vmem:[%s3202_s10 + $0x170] ss:$20 sps:$4 sm:$0xff]   ;;  %v2987_v35 = vld [vmem:[%s3202_s10 + $0x128] ss:$20 sps:$4 sm:$0xff]  }
  0x35   : > { %2618 = vmatprep.subr.bf16.mxu1 %v2893_v28  ;;  %2750 = vmatprep.subr.bf16.mxu0 %v2936_v47  ;;  %v2978_v28 = vld [vmem:[%s3202_s10 + $0x19c] ss:$20 sps:$4 sm:$0xff]  }
  0x37   : > { %1243 = vmatmul.mubr.bf16.gmra.mrb[4].mxu0 %v2891_v27  ;;  %1339 = vmatmul.mubr.bf16.gmra.mrb[4].mxu1 %v2892_v29  ;;  %v2977_v27 = vld [vmem:[%s3202_s10 + $0x88] ss:$20 sps:$4 sm:$0xff]   ;;  %v2980_v29 = vld [vmem:[%s3202_s10 + $0xb0] ss:$20 sps:$4 sm:$0xff]  }
  0x38   : > { %2619 = vmatpush3.bf16.msra.mxu1 %v2894_v30  ;;  %1250 = vmatprep.mubr.bf16.mxu0 %v2897_v32  ;;  %v2981_v30 = vld [vmem:[%s3202_s10 + $0x198] ss:$20 sps:$4 sm:$0xff]  }
  0x39   : > { %2620 = vmatprep.subr.bf16.mxu1 %v2895_v31  ;;  %1346 = vmatprep.mubr.bf16.mxu1 %v2899_v33  ;;  %v2982_v31 = vld [vmem:[%s3202_s10 + $0xd8] ss:$20 sps:$4 sm:$0xff]   ;;  %v2985_v33 = vld [vmem:[%s3202_s10 + $0x100] ss:$20 sps:$4 sm:$0xff]  }
  0x3a   : > { %2751 = vmatpush3.bf16.msra.mxu0 %v2936_v47  ;;  %v2983_v32 = vld [vmem:[%s3202_s10 + $0x1c4] ss:$20 sps:$4 sm:$0xff]  }
  0x3b   : > { %2752 = vmatprep.subr.bf16.mxu0 %v2955_v56  ;;  %v3002_v47 = vld [vmem:[%s3202_s10 + $0x218] ss:$20 sps:$4 sm:$0xff]  }
  0x3c   : > { %2621 = vmatpush3.bf16.msra.mxu1 %v2896_v34  ;;  %v2986_v34 = vld [vmem:[%s3202_s10 + $0x1c0] ss:$20 sps:$4 sm:$0xff]  }
  0x3d   : > { %2622 = vmatprep.subr.bf16.mxu1 %v2903_v37  ;;  %v2990_v37 = vld [vmem:[%s3202_s10 + $0x150] ss:$20 sps:$4 sm:$0xff]  }
  0x3e   : > { %2753 = vmatpush3.bf16.msra.mxu0 %v2955_v56 }
  0x3f   : > { %1251 = vmatmul.mubr.bf16.gmra.mrb[8].mxu0 %v2901_v36  ;;  %1347 = vmatmul.mubr.bf16.gmra.mrb[8].mxu1 %v2902_v38  ;;  %v2988_v36 = vld [vmem:[%s3202_s10 + $0x1ec] ss:$20 sps:$4 sm:$0xff]   ;;  %v2991_v38 = vld [vmem:[%s3202_s10 + $0x1e8] ss:$20 sps:$4 sm:$0xff]  }
  0x40   : > { %2623 = vmatpush3.bf16.msra.mxu1 %v2904_v39  ;;  %1258 = vmatprep.mubr.bf16.mxu0 %v2907_v41  ;;  %v2992_v39 = vld [vmem:[%s3202_s10 + $0x178] ss:$20 sps:$4 sm:$0xff]   ;;  %v2995_v41 = vld [vmem:[%s3202_s10 + $0x1a0] ss:$20 sps:$4 sm:$0xff]  }
  0x41   : > { %2624 = vmatprep.subr.bf16.mxu1 %v2905_v40  ;;  %1354 = vmatprep.mubr.bf16.mxu1 %v2909_v42  ;;  %v2993_v40 = vld [vmem:[%s3202_s10 + $0x214] ss:$20 sps:$4 sm:$0xff]   ;;  %v2996_v42 = vld [vmem:[%s3202_s10 + $0x210] ss:$20 sps:$4 sm:$0xff]  }
  0x44   : > { %2625 = vmatpush3.bf16.msra.mxu1 %v2906_v43  ;;  %v2997_v43 = vld [vmem:[%s3202_s10 + $0x1c8] ss:$20 sps:$4 sm:$0xff]  }
  0x45   : > { %2626 = vmatprep.subr.bf16.mxu1 %v2913_v46  ;;  %v3001_v46 = vld [vmem:[%s3202_s10 + $0x238] ss:$20 sps:$4 sm:$0xff]  }
  0x47   : > { %1259 = vmatmul.mubr.bf16.gmra.mrb[12].mxu0 %v2911_v44  ;;  %1355 = vmatmul.mubr.bf16.gmra.mrb[12].mxu1 %v2912_v45  ;;  %v2998_v44 = vld [vmem:[%s3202_s10 + $0x23c] ss:$20 sps:$4 sm:$0xff]  }
  0x48   : > { %2627 = vmatpush3.bf16.msra.mxu1 %v2914_v48  ;;  %1266 = vmatprep.mubr.bf16.mxu0 %v2918_v50  ;;  %v3000_v45 = vld [vmem:[%s3202_s10 + $0x1f0] ss:$20 sps:$4 sm:$0xff]   ;;  %v3006_v50 = vld [vmem:[%s3202_s10 + $0x260] ss:$20 sps:$4 sm:$0xff]  }
  0x49   : > { %2628 = vmatprep.subr.bf16.mxu1 %v2915_v49  ;;  %1395 = vmatprep.mubr.bf16.mxu1 %v2922_v51  ;;  %v3003_v48 = vld [vmem:[%s3202_s10 + $0x264] ss:$20 sps:$4 sm:$0xff]   ;;  %v3005_v49 = vld [vmem:[%s3202_s10 + $0x240] ss:$20 sps:$4 sm:$0xff]   ;;  %v3007_v51 = vld [vmem:[%s3202_s10 + $0x268] ss:$20 sps:$4 sm:$0xff]  }
  0x4c   : > { %2629 = vmatpush3.bf16.msra.mxu1 %v2917_v52 }
  0x4f   : > { %1267 = vmatmul.mubr.bf16.gmra.mrb[16].mxu0 %v2923_v54  ;;  %1396 = vmatmul.mubr.bf16.vlgmr.msra.gmra.mrb[16].mxu1 %v2920_v53 }
  0x50   : > { %1274 = vmatprep.mubr.bf16.mxu0 %v2924_v55  ;;  %1403 = vmatprep.mubr.bf16.mxu1 %v2926_v57 }
  0x57   : > { %1275 = vmatmul.mubr.bf16.gmra.mrb[20].mxu0 %v2928_v58  ;;  %1404 = vmatmul.mubr.bf16.gmra.mrb[20].mxu1 %v2929_v59 }
  0x58   : > { %1282 = vmatprep.mubr.bf16.mxu0 %v2930_v60  ;;  %1411 = vmatprep.mubr.bf16.mxu1 %v2932_v61 }
  0x5f   : > { %1283 = vmatmul.mubr.bf16.gmra.mrb[24].mxu0 %v2934_v62  ;;  %1412 = vmatmul.mubr.bf16.gmra.mrb[24].mxu1 %v2935_v63 }
  0x60   : > { %1290 = vmatprep.mubr.bf16.mxu0 %v2937_v0  ;;  %1419 = vmatprep.mubr.bf16.mxu1 %v2939_v1 }
  0x67   : > { %1291 = vmatmul.mubr.bf16.gmra.mrb[28].mxu0 %v2941_v2  ;;  %1420 = vmatmul.mubr.bf16.gmra.mrb[28].mxu1 %v2942_v3 }
  0x68   : > { %1298 = vmatprep.mubr.bf16.mxu0 %v2943_v4  ;;  %1427 = vmatprep.mubr.bf16.mxu1 %v2945_v5 }
  0x6f   : > { %1299 = vmatmul.mubr.bf16.gmra.mrb[32].mxu0 %v2947_v6  ;;  %1428 = vmatmul.mubr.bf16.gmra.mrb[32].mxu1 %v2948_v7 }
  0x70   : > { %1306 = vmatprep.mubr.bf16.mxu0 %v2949_v8  ;;  %1435 = vmatprep.mubr.bf16.mxu1 %v2951_v9 }
  0x77   : > { %1307 = vmatmul.mubr.bf16.gmra.mrb[36].mxu0 %v2953_v10  ;;  %1436 = vmatmul.mubr.bf16.gmra.mrb[36].mxu1 %v2954_v11 }
  0x78   : > { %1314 = vmatprep.mubr.bf16.mxu0 %v2956_v12  ;;  %1443 = vmatprep.mubr.bf16.mxu1 %v2958_v13 }
  0x7f   : > { %1315 = vmatmul.mubr.bf16.gmra.mrb[40].mxu0 %v2960_v14  ;;  %1444 = vmatmul.mubr.bf16.gmra.mrb[40].mxu1 %v2961_v15 }
  0x80   : > { %1322 = vmatprep.mubr.bf16.mxu0 %v2962_v16  ;;  %1451 = vmatprep.mubr.bf16.mxu1 %v2964_v17 }
  0x87   : > { %1323 = vmatmul.mubr.bf16.gmra.mrb[44].mxu0 %v2966_v18  ;;  %1452 = vmatmul.mubr.bf16.gmra.mrb[44].mxu1 %v2967_v19 }
  0x88   : > { %1459 = vmatprep.mubr.bf16.mxu1 %v2968_v20  ;;  %2754 = vmatprep.mubr.msk.bf16.mxu0 %vm1153_vm0, %v2970_v21 }
  0x8f   : > { %1460 = vmatmul.mubr.bf16.gmra.mrb[48].mxu1 %v2971_v22  ;;  %2755 = vmatmul.mubr.msk.bf16.vlgmr.msra.gmra.mrb[48].mxu0 %vm1153_vm0, %v2972_v23 }
  0x90   : > { %1467 = vmatprep.mubr.bf16.mxu1 %v2973_v24  ;;  %2758 = vmatprep.mubr.msk.bf16.mxu0 %vm1153_vm0, %v2975_v25 }
  0x97   : > { %1468 = vmatmul.mubr.bf16.gmra.mrb[52].mxu1 %v2976_v26  ;;  %2759 = vmatmul.mubr.msk.bf16.gmra.mrb[52].mxu0 %vm1153_vm0, %v2977_v27 }
  0x98   : > { %1475 = vmatprep.mubr.bf16.mxu1 %v2978_v28  ;;  %2762 = vmatprep.mubr.msk.bf16.mxu0 %vm1153_vm0, %v2980_v29 }
  0x9f   : > { %1476 = vmatmul.mubr.bf16.gmra.mrb[56].mxu1 %v2981_v30  ;;  %2763 = vmatmul.mubr.msk.bf16.gmra.mrb[56].mxu0 %vm1153_vm0, %v2982_v31 }
  0xa0   : > { %1483 = vmatprep.mubr.bf16.mxu1 %v2983_v32  ;;  %2766 = vmatprep.mubr.msk.bf16.mxu0 %vm1153_vm0, %v2985_v33 }
  0xa7   : > { %1484 = vmatmul.mubr.bf16.gmra.mrb[60].mxu1 %v2986_v34  ;;  %2767 = vmatmul.mubr.msk.bf16.gmra.mrb[60].mxu0 %vm1153_vm0, %v2987_v35 }
  0xa8   : > { %1491 = vmatprep.mubr.bf16.mxu1 %v2988_v36  ;;  %2770 = vmatprep.mubr.msk.bf16.mxu0 %vm1153_vm0, %v2990_v37 }
  0xaf   : > { %1492 = vmatmul.mubr.bf16.gmra.mrb[64].mxu1 %v2991_v38  ;;  %2771 = vmatmul.mubr.msk.bf16.gmra.mrb[64].mxu0 %vm1153_vm0, %v2992_v39 }
  0xb0   : > { %1499 = vmatprep.mubr.bf16.mxu1 %v2993_v40  ;;  %2774 = vmatprep.mubr.msk.bf16.mxu0 %vm1153_vm0, %v2995_v41 }
  0xb7   : > { %1500 = vmatmul.mubr.bf16.gmra.mrb[68].mxu1 %v2996_v42  ;;  %2775 = vmatmul.mubr.msk.bf16.gmra.mrb[68].mxu0 %vm1153_vm0, %v2997_v43 }
  0xb8   : > { %1507 = vmatprep.mubr.bf16.mxu1 %v2998_v44  ;;  %2778 = vmatprep.mubr.msk.bf16.mxu0 %vm1153_vm0, %v3000_v45 }
  0xbf   : > { %1508 = vmatmul.mubr.bf16.gmra.mrb[72].mxu1 %v3001_v46  ;;  %2779 = vmatmul.mubr.msk.bf16.gmra.mrb[72].mxu0 %vm1153_vm0, %v3002_v47 }
  0xc0   : > { %1515 = vmatprep.mubr.bf16.mxu1 %v3003_v48  ;;  %2782 = vmatprep.mubr.msk.bf16.mxu0 %vm1153_vm0, %v3005_v49 }
  0xc7   : > { %1516 = vmatmul.mubr.bf16.gmra.mrb[76].mxu1 %v3006_v50  ;;  %2783 = vmatmul.mubr.msk.bf16.gmra.mrb[76].mxu0 %vm1153_vm0, %v3007_v51 }
 0x102   : > { %v2590_v52 = vpop.f32.mrb[0].mxu1  ;;  %v2518_v53 = vpop.f32.mrb[0].mxu0 }
 0x103   : > { %v2591_v54 = vpop.f32.mrb[1].mxu1  ;;  %v2519_v55 = vpop.f32.mrb[1].mxu0 }
 0x104   : > { %v3381_v56 = vadd.f32 %v2591_v54, %v2590_v52  ;;  %v2593_v57 = vpop.f32.mrb[2].mxu1  ;;  %v2520_v58 = vadd.f32 %v2519_v55, %v2518_v53  ;;  %v2521_v59 = vpop.f32.mrb[2].mxu0 }
 0x105   : > { %v2594_v60 = vpop.f32.mrb[3].mxu1  ;;  %v2522_v61 = vpop.f32.mrb[3].mxu0 }
 0x106   : > { %v3383_v62 = vadd.f32 %v2594_v60, %v2593_v57  ;;  %v2523_v63 = vadd.f32 %v2522_v61, %v2521_v59 }
 0x10a   : > { %v2596_v0 = vpop.f32.mrb[4].mxu1  ;;  %v2524_v1 = vpop.f32.mrb[4].mxu0 }
 0x10b   : > { %v2597_v2 = vpop.f32.mrb[5].mxu1  ;;  %v2525_v3 = vpop.f32.mrb[5].mxu0 }
 0x10c   : > { %v3385_v4 = vadd.f32 %v2597_v2, %v2596_v0  ;;  %v2599_v5 = vpop.f32.mrb[6].mxu1  ;;  %v2526_v6 = vadd.f32 %v2525_v3, %v2524_v1  ;;  %v2527_v7 = vpop.f32.mrb[6].mxu0 }
 0x10d   : > { %v2600_v8 = vpop.f32.mrb[7].mxu1  ;;  %v2528_v9 = vpop.f32.mrb[7].mxu0 }
 0x10e   : > { %v3387_v10 = vadd.f32 %v2600_v8, %v2599_v5  ;;  %v2529_v11 = vadd.f32 %v2528_v9, %v2527_v7 }
 0x112   : > { %v2602_v12 = vpop.f32.mrb[8].mxu1  ;;  %v2530_v13 = vpop.f32.mrb[8].mxu0 }
 0x113   : > { %v2603_v14 = vpop.f32.mrb[9].mxu1  ;;  %v2531_v15 = vpop.f32.mrb[9].mxu0 }
 0x114   : > { %v3389_v16 = vadd.f32 %v2603_v14, %v2602_v12  ;;  %v2605_v17 = vpop.f32.mrb[10].mxu1  ;;  %v2532_v18 = vadd.f32 %v2531_v15, %v2530_v13  ;;  %v2533_v19 = vpop.f32.mrb[10].mxu0 }
 0x115   : > { %v2606_v20 = vpop.f32.mrb[11].mxu1  ;;  %v2534_v21 = vpop.f32.mrb[11].mxu0 }
 0x116   : > { %v3391_v22 = vadd.f32 %v2606_v20, %v2605_v17  ;;  %v2535_v23 = vadd.f32 %v2534_v21, %v2533_v19 }
 0x11a   : > { %v2608_v24 = vpop.f32.mrb[12].mxu1  ;;  %v2536_v25 = vpop.f32.mrb[12].mxu0 }
 0x11b   : > { %v2609_v26 = vpop.f32.mrb[13].mxu1  ;;  %v2537_v27 = vpop.f32.mrb[13].mxu0 }
 0x11c   : > { %v3393_v28 = vadd.f32 %v2609_v26, %v2608_v24  ;;  %v2611_v29 = vpop.f32.mrb[14].mxu1  ;;  %v2538_v30 = vadd.f32 %v2537_v27, %v2536_v25  ;;  %v2539_v31 = vpop.f32.mrb[14].mxu0 }
 0x11d   : > { %v2612_v32 = vpop.f32.mrb[15].mxu1  ;;  %v2540_v33 = vpop.f32.mrb[15].mxu0 }
 0x11e   : > { %v3395_v34 = vadd.f32 %v2612_v32, %v2611_v29  ;;  %v2541_v35 = vadd.f32 %v2540_v33, %v2539_v31 }
 0x122   : > { %v2630_v36 = vpop.f32.mrb[16].mxu1  ;;  %v2542_v37 = vpop.f32.mrb[16].mxu0 }
 0x123   : > { %v2631_v38 = vpop.f32.mrb[17].mxu1  ;;  %v2543_v39 = vpop.f32.mrb[17].mxu0 }
 0x124   : > { %v2632_v40 = vadd.f32 %v2631_v38, %v2630_v36  ;;  %v2633_v41 = vpop.f32.mrb[18].mxu1  ;;  %v2544_v42 = vadd.f32 %v2543_v39, %v2542_v37  ;;  %v2545_v43 = vpop.f32.mrb[18].mxu0 }
 0x125   : > { %v2634_v44 = vpop.f32.mrb[19].mxu1  ;;  %v2546_v45 = vpop.f32.mrb[19].mxu0 }
 0x126   : > { %v2635_v46 = vadd.f32 %v2634_v44, %v2633_v41  ;;  %v2547_v47 = vadd.f32 %v2546_v45, %v2545_v43  ;;  %v3397_v48 = vadd.f32 %v2632_v40, %v2520_v58 }
 0x128   : > { %v3399_v49 = vadd.f32 %v2635_v46, %v2523_v63 }
 0x12a   : > { %v2636_v50 = vpop.f32.mrb[20].mxu1  ;;  %v2548_v51 = vpop.f32.mrb[20].mxu0 }
 0x12b   : > { %v2637_v52 = vpop.f32.mrb[21].mxu1  ;;  %v2549_v53 = vpop.f32.mrb[21].mxu0 }
 0x12c   : > { %v2638_v54 = vadd.f32 %v2637_v52, %v2636_v50  ;;  %v2639_v55 = vpop.f32.mrb[22].mxu1  ;;  %v2550_v57 = vadd.f32 %v2549_v53, %v2548_v51  ;;  %v2551_v59 = vpop.f32.mrb[22].mxu0 }
 0x12d   : > { %v2640_v60 = vpop.f32.mrb[23].mxu1  ;;  %v2552_v61 = vpop.f32.mrb[23].mxu0 }
 0x12e   : > { %v2641_v0 = vadd.f32 %v2640_v60, %v2639_v55  ;;  %v2553_v1 = vadd.f32 %v2552_v61, %v2551_v59  ;;  %v3401_v2 = vadd.f32 %v2638_v54, %v2526_v6 }
 0x130   : > { %v3403_v3 = vadd.f32 %v2641_v0, %v2529_v11 }
 0x132   : > { %v2642_v58 = vpop.f32.mrb[24].mxu1  ;;  %v2554_v5 = vpop.f32.mrb[24].mxu0 }
 0x133   : > { %v2643_v63 = vpop.f32.mrb[25].mxu1  ;;  %v2555_v7 = vpop.f32.mrb[25].mxu0 }
 0x134   : > { %v2644_v8 = vadd.f32 %v2643_v63, %v2642_v58  ;;  %v2645_v9 = vpop.f32.mrb[26].mxu1  ;;  %v2556_v12 = vadd.f32 %v2555_v7, %v2554_v5  ;;  %v2557_v13 = vpop.f32.mrb[26].mxu0 }
 0x135   : > { %v2646_v14 = vpop.f32.mrb[27].mxu1  ;;  %v2558_v15 = vpop.f32.mrb[27].mxu0 }
 0x136   : > { %v2647_v17 = vadd.f32 %v2646_v14, %v2645_v9  ;;  %v2559_v19 = vadd.f32 %v2558_v15, %v2557_v13  ;;  %v3405_v20 = vadd.f32 %v2644_v8, %v2532_v18 }
 0x138   : > { %v3407_v21 = vadd.f32 %v2647_v17, %v2535_v23 }
 0x13a   : > { %v2648_v6 = vpop.f32.mrb[28].mxu1  ;;  %v2560_v24 = vpop.f32.mrb[28].mxu0 }
 0x13b   : > { %v2649_v11 = vpop.f32.mrb[29].mxu1  ;;  %v2561_v25 = vpop.f32.mrb[29].mxu0 }
 0x13c   : > { %v2650_v26 = vadd.f32 %v2649_v11, %v2648_v6  ;;  %v2651_v27 = vpop.f32.mrb[30].mxu1  ;;  %v2562_v29 = vadd.f32 %v2561_v25, %v2560_v24  ;;  %v2563_v31 = vpop.f32.mrb[30].mxu0 }
 0x13d   : > { %v2652_v32 = vpop.f32.mrb[31].mxu1  ;;  %v2564_v33 = vpop.f32.mrb[31].mxu0 }
 0x13e   : > { %v2653_v36 = vadd.f32 %v2652_v32, %v2651_v27  ;;  %v2565_v37 = vadd.f32 %v2564_v33, %v2563_v31  ;;  %v3409_v38 = vadd.f32 %v2650_v26, %v2538_v30 }
 0x140   : > { %v3411_v39 = vadd.f32 %v2653_v36, %v2541_v35 }
 0x142   : > { %v2654_v18 = vpop.f32.mrb[32].mxu1  ;;  %v2566_v40 = vpop.f32.mrb[32].mxu0 }
 0x143   : > { %v2655_v23 = vpop.f32.mrb[33].mxu1  ;;  %v2567_v41 = vpop.f32.mrb[33].mxu0 }
 0x144   : > { %v2656_v43 = vadd.f32 %v2655_v23, %v2654_v18  ;;  %v2657_v44 = vpop.f32.mrb[34].mxu1  ;;  %v3413_v45 = vadd.f32 %v2567_v41, %v2566_v40  ;;  %v2569_v46 = vpop.f32.mrb[34].mxu0 }
 0x145   : > { %v2658_v50 = vpop.f32.mrb[35].mxu1  ;;  %v2570_v51 = vpop.f32.mrb[35].mxu0 }
 0x146   : > { %v2659_v52 = vadd.f32 %v2658_v50, %v2657_v44  ;;  %v3415_v53 = vadd.f32 %v2570_v51, %v2569_v46  ;;  %v3417_v54 = vadd.f32 %v2656_v43, %v2544_v42 }
 0x148   : > { %v3419_v30 = vadd.f32 %v2659_v52, %v2547_v47 }
 0x14a   : > { %v2660_v35 = vpop.f32.mrb[36].mxu1  ;;  %v2572_v55 = vpop.f32.mrb[36].mxu0 }
 0x14b   : > { %v2661_v59 = vpop.f32.mrb[37].mxu1  ;;  %v2573_v60 = vpop.f32.mrb[37].mxu0 }
 0x14c   : > { %v2662_v61 = vadd.f32 %v2661_v59, %v2660_v35  ;;  %v2663_v0 = vpop.f32.mrb[38].mxu1  ;;  %v3421_v58 = vadd.f32 %v2573_v60, %v2572_v55  ;;  %v2575_v5 = vpop.f32.mrb[38].mxu0  ;;  %v3448_v59 = vld [vmem:[%s3649_s2] ss:$0 sm:$0xff] }
 0x14d   : > { %v2664_v63 = vpop.f32.mrb[39].mxu1  ;;  %v2576_v7 = vpop.f32.mrb[39].mxu0 }
 0x14e   : > { %v2665_v8 = vadd.f32 %v2664_v63, %v2663_v0  ;;  %v3423_v9 = vadd.f32 %v2576_v7, %v2575_v5  ;;  %v3425_v13 = vadd.f32 %v2662_v61, %v2550_v57  ;;  %v3454_v5 = vld [vmem:[%s3650_s3] ss:$0 sm:$0xff] }
 0x150   : > { %v3427_v42 = vadd.f32 %v2665_v8, %v2553_v1 }
 0x152   : > { %v2666_v47 = vpop.f32.mrb[40].mxu1  ;;  %v2578_v14 = vpop.f32.mrb[40].mxu0 }
 0x153   : > { %v2667_v15 = vpop.f32.mrb[41].mxu1  ;;  %v2579_v17 = vpop.f32.mrb[41].mxu0 }
 0x154   : > { %v2668_v6 = vadd.f32 %v2667_v15, %v2666_v47  ;;  %v2669_v24 = vpop.f32.mrb[42].mxu1  ;;  %v3429_v11 = vadd.f32 %v2579_v17, %v2578_v14  ;;  %v2581_v25 = vpop.f32.mrb[42].mxu0 }
 0x155   : > { %v2670_v26 = vpop.f32.mrb[43].mxu1  ;;  %v2582_v27 = vpop.f32.mrb[43].mxu0 }
 0x156   : > { %v2671_v31 = vadd.f32 %v2670_v26, %v2669_v24  ;;  %v3431_v32 = vadd.f32 %v2582_v27, %v2581_v25  ;;  %v3433_v33 = vadd.f32 %v2668_v6, %v2556_v12 }
 0x158   : > { %v3435_v57 = vadd.f32 %v2671_v31, %v2559_v19 }
 0x15a   : > { %v2672_v1 = vpop.f32.mrb[44].mxu1  ;;  %v2584_v36 = vpop.f32.mrb[44].mxu0 }
 0x15b   : > { %v2673_v18 = vpop.f32.mrb[45].mxu1  ;;  %v2585_v40 = vpop.f32.mrb[45].mxu0 }
 0x15c   : > { %v2674_v23 = vadd.f32 %v2673_v18, %v2672_v1  ;;  %v2675_v41 = vpop.f32.mrb[46].mxu1  ;;  %v3437_v43 = vadd.f32 %v2585_v40, %v2584_v36  ;;  %v2587_v44 = vpop.f32.mrb[46].mxu0 }
 0x15d   : > { %v2676_v46 = vpop.f32.mrb[47].mxu1  ;;  %v2588_v50 = vpop.f32.mrb[47].mxu0 }
 0x15e   : > { %v2677_v51 = vadd.f32 %v2676_v46, %v2675_v41  ;;  %v3439_v52 = vadd.f32 %v2588_v50, %v2587_v44  ;;  %v3441_v35 = vadd.f32 %v2674_v23, %v2562_v29 }
 0x160   : > { %v3443_v12 = vadd.f32 %v2677_v51, %v2565_v37 }
 0x162   : > { %v2678_v19 = vpop.f32.mrb[48].mxu1  ;;  %v2756_v55 = vpop.f32.mrb[48].mxu0 }
 0x163   : > { %v1567_v60 = vadd.f32 %v2756_v55, %v3401_v2  ;;  %v2679_v61 = vpop.f32.mrb[49].mxu1  ;;  %v1558_v0 = vpop.f32.mrb[49].mxu0 }
 0x164   : > { %v2680_v29 = vadd.f32 %v2679_v61, %v2678_v19  ;;  %v1559_v37 = vadd.f32 %v1558_v0, %v3397_v48  ;;  %v2681_v63 = vpop.f32.mrb[50].mxu1  ;;  %v2757_v7 = vpop.f32.mrb[50].mxu0 }
 0x165   : > { %v1793_v8 = vmul.f32 %v3448_v59, %v1567_v60  ;;  %v1570_v47 = vadd.f32 %v2757_v7, %v3403_v3  ;;  %v2682_v14 = vpop.f32.mrb[51].mxu1  ;;  %v1561_v15 = vpop.f32.mrb[51].mxu0 }
 0x166   : > { %v1791_v2 = vmul.f32 %v3448_v59, %v1559_v37  ;;  %v2683_v17 = vadd.f32 %v2682_v14, %v2681_v63  ;;  %v1562_v6 = vadd.f32 %v1561_v15, %v3399_v49  ;;  %v3463_v24 = vadd.f32 %v2680_v29, %v3413_v45 }
 0x167   : > { %v1832_v48 = vadd.f32 %v3454_v5, %v1793_v8  ;;  %v1794_v25 = vmul.f32 %v3448_v59, %v1570_v47 }
 0x168   : > { %v1830_v26 = vadd.f32 %v3454_v5, %v1791_v2  ;;  %v1792_v27 = vmul.f32 %v3448_v59, %v1562_v6  ;;  %v3470_v3 = vadd.f32 %v2683_v17, %v3415_v53 }
 0x169   : > { %v1833_v31 = vadd.f32 %v3454_v5, %v1794_v25  ;;  %v1864_v36 = vmax.f32 %v1832_v48, 0.0 }
 0x16a   : > { %v1831_v49 = vadd.f32 %v3454_v5, %v1792_v27  ;;  %v2684_v1 = vpop.f32.mrb[52].mxu1  ;;  %v2760_v45 = vpop.f32.mrb[52].mxu0  ;;  %v1862_v44 = vmax.f32 %v1830_v26, 0.0 }
 0x16b   : > { %v1865_v18 = vmax.f32 %v1833_v31, 0.0  ;;  %v1583_v40 = vadd.f32 %v2760_v45, %v3409_v38  ;;  %v2685_v23 = vpop.f32.mrb[53].mxu1  ;;  %v1574_v41 = vpop.f32.mrb[53].mxu0 }
 0x16c   : > { %v1863_v46 = vmax.f32 %v1831_v49, 0.0  ;;  %v2686_v50 = vadd.f32 %v2685_v23, %v2684_v1  ;;  %v1575_v53 = vadd.f32 %v1574_v41, %v3405_v20  ;;  %v2687_v51 = vpop.f32.mrb[54].mxu1  ;;  %v2761_v19 = vpop.f32.mrb[54].mxu0 }
 0x16d   : > { %v2415_v55 = vpack.c.bf16 %v1865_v18, %v1864_v36  ;;  %v1797_v60 = vmul.f32 %v3448_v59, %v1583_v40  ;;  %v1586_v61 = vadd.f32 %v2761_v19, %v3411_v39  ;;  %v2688_v0 = vpop.f32.mrb[55].mxu1  ;;  %v1577_v29 = vpop.f32.mrb[55].mxu0 }
 0x16e   : > { %v2410_v37 = vpack.c.bf16 %v1863_v46, %v1862_v44  ;;  %v1795_v63 = vmul.f32 %v3448_v59, %v1575_v53  ;;  %v2689_v38 = vadd.f32 %v2688_v0, %v2687_v51  ;;  %v1578_v7 = vadd.f32 %v1577_v29, %v3407_v21 }
 0x16f   : > { %2487 = vst [vmem:[%s3482_s9 + $0x8] sm:$0xff] %v2415_v55   ;;  %v1836_v20 = vadd.f32 %v3454_v5, %v1797_v60  ;;  %v1798_v8 = vmul.f32 %v3448_v59, %v1586_v61  ;;  %v3488_v47 = vadd.f32 %v2686_v50, %v3421_v58 }
 0x170   : > { %2411 = vst [vmem:[%s3482_s9] sm:$0xff] %v2410_v37   ;;  %v1834_v39 = vadd.f32 %v3454_v5, %v1795_v63  ;;  %v1796_v14 = vmul.f32 %v3448_v59, %v1578_v7  ;;  %v3494_v15 = vadd.f32 %v2689_v38, %v3423_v9 }
 0x171   : > { %v1837_v21 = vadd.f32 %v3454_v5, %v1798_v8  ;;  %v1868_v48 = vmax.f32 %v1836_v20, 0.0 }
 0x172   : > { %v1835_v2 = vadd.f32 %v3454_v5, %v1796_v14  ;;  %v2690_v17 = vpop.f32.mrb[56].mxu1  ;;  %v2764_v6 = vpop.f32.mrb[56].mxu0  ;;  %v1866_v31 = vmax.f32 %v1834_v39, 0.0 }
 0x173   : > { %v1869_v25 = vmax.f32 %v1837_v21, 0.0  ;;  %v1599_v26 = vadd.f32 %v2764_v6, %v3425_v13  ;;  %v2691_v58 = vpop.f32.mrb[57].mxu1  ;;  %v1590_v27 = vpop.f32.mrb[57].mxu0 }
 0x174   : > { %v1867_v49 = vmax.f32 %v1835_v2, 0.0  ;;  %v2692_v1 = vadd.f32 %v2691_v58, %v2690_v17  ;;  %v1591_v45 = vadd.f32 %v1590_v27, %v3417_v54  ;;  %v2693_v9 = vpop.f32.mrb[58].mxu1  ;;  %v2765_v36 = vpop.f32.mrb[58].mxu0 }
 0x175   : > { %v2425_v18 = vpack.c.bf16 %v1869_v25, %v1868_v48  ;;  %v1801_v40 = vmul.f32 %v3448_v59, %v1599_v26  ;;  %v1602_v23 = vadd.f32 %v2765_v36, %v3427_v42  ;;  %v2694_v41 = vpop.f32.mrb[59].mxu1  ;;  %v1593_v44 = vpop.f32.mrb[59].mxu0 }
 0x176   : > { %v2420_v46 = vpack.c.bf16 %v1867_v49, %v1866_v31  ;;  %v1799_v13 = vmul.f32 %v3448_v59, %v1591_v45  ;;  %v2695_v50 = vadd.f32 %v2694_v41, %v2693_v9  ;;  %v1594_v53 = vadd.f32 %v1593_v44, %v3419_v30 }
 0x177   : > { %2489 = vst [vmem:[%s3482_s9 + $0x18] sm:$0xff] %v2425_v18   ;;  %v1840_v51 = vadd.f32 %v3454_v5, %v1801_v40  ;;  %v1802_v54 = vmul.f32 %v3448_v59, %v1602_v23  ;;  %v3508_v19 = vadd.f32 %v2692_v1, %v3429_v11 }
 0x178   : > { %2488 = vst [vmem:[%s3482_s9 + $0x10] sm:$0xff] %v2420_v46   ;;  %v1838_v55 = vadd.f32 %v3454_v5, %v1799_v13  ;;  %v1800_v42 = vmul.f32 %v3448_v59, %v1594_v53  ;;  %v3514_v60 = vadd.f32 %v2695_v50, %v3431_v32 }
 0x179   : > { %v1841_v61 = vadd.f32 %v3454_v5, %v1802_v54  ;;  %v1872_v37 = vmax.f32 %v1840_v51, 0.0 }
 0x17a   : > { %v1839_v30 = vadd.f32 %v3454_v5, %v1800_v42  ;;  %v2696_v0 = vpop.f32.mrb[60].mxu1  ;;  %v2768_v29 = vpop.f32.mrb[60].mxu0  ;;  %v1870_v20 = vmax.f32 %v1838_v55, 0.0 }
 0x17b   : > { %v1873_v63 = vmax.f32 %v1841_v61, 0.0  ;;  %v1615_v38 = vadd.f32 %v2768_v29, %v3441_v35  ;;  %v2697_v11 = vpop.f32.mrb[61].mxu1  ;;  %v1606_v7 = vpop.f32.mrb[61].mxu0 }
 0x17c   : > { %v1871_v8 = vmax.f32 %v1839_v30, 0.0  ;;  %v2698_v39 = vadd.f32 %v2697_v11, %v2696_v0  ;;  %v1607_v14 = vadd.f32 %v1606_v7, %v3433_v33  ;;  %v2699_v32 = vpop.f32.mrb[62].mxu1  ;;  %v2769_v21 = vpop.f32.mrb[62].mxu0 }
 0x17d   : > { %v2435_v2 = vpack.c.bf16 %v1873_v63, %v1872_v37  ;;  %v1805_v17 = vmul.f32 %v3448_v59, %v1615_v38  ;;  %v1618_v6 = vadd.f32 %v2769_v21, %v3443_v12  ;;  %v2700_v48 = vpop.f32.mrb[63].mxu1  ;;  %v1609_v25 = vpop.f32.mrb[63].mxu0 }
 0x17e   : > { %v2430_v26 = vpack.c.bf16 %v1871_v8, %v1870_v20  ;;  %v1803_v35 = vmul.f32 %v3448_v59, %v1607_v14  ;;  %v2701_v58 = vadd.f32 %v2700_v48, %v2699_v32  ;;  %v1610_v27 = vadd.f32 %v1609_v25, %v3435_v57 }
 0x17f   : > { %2491 = vst [vmem:[%s3482_s9 + $0x28] sm:$0xff] %v2435_v2   ;;  %v1844_v31 = vadd.f32 %v3454_v5, %v1805_v17  ;;  %v1806_v33 = vmul.f32 %v3448_v59, %v1618_v6  ;;  %v1486_v49 = vadd.f32 %v2698_v39, %v3437_v43 }
 0x180   : > { %2490 = vst [vmem:[%s3482_s9 + $0x20] sm:$0xff] %v2430_v26   ;;  %v1842_v1 = vadd.f32 %v3454_v5, %v1803_v35  ;;  %v1804_v12 = vmul.f32 %v3448_v59, %v1610_v27  ;;  %v1489_v45 = vadd.f32 %v2701_v58, %v3439_v52 }
 0x181   : > { %v1845_v9 = vadd.f32 %v3454_v5, %v1806_v33  ;;  %v1876_v40 = vmax.f32 %v1844_v31, 0.0 }
 0x182   : > { %v1843_v36 = vadd.f32 %v3454_v5, %v1804_v12  ;;  %v2702_v18 = vpop.f32.mrb[64].mxu1  ;;  %v2772_v57 = vpop.f32.mrb[64].mxu0  ;;  %v1874_v43 = vmax.f32 %v1842_v1, 0.0 }
 0x183   : > { %v1877_v23 = vmax.f32 %v1845_v9, 0.0  ;;  %v1631_v41 = vadd.f32 %v2772_v57, %v3488_v47  ;;  %v2703_v44 = vpop.f32.mrb[65].mxu1  ;;  %v1622_v46 = vpop.f32.mrb[65].mxu0 }
 0x184   : > { %v1875_v13 = vmax.f32 %v1843_v36, 0.0  ;;  %v2704_v50 = vadd.f32 %v2703_v44, %v2702_v18  ;;  %v1623_v53 = vadd.f32 %v1622_v46, %v3463_v24  ;;  %v2705_v52 = vpop.f32.mrb[66].mxu1  ;;  %v2773_v51 = vpop.f32.mrb[66].mxu0 }
 0x185   : > { %v2445_v54 = vpack.c.bf16 %v1877_v23, %v1876_v40  ;;  %v1809_v55 = vmul.f32 %v3448_v59, %v1631_v41  ;;  %v1634_v42 = vadd.f32 %v2773_v51, %v3494_v15  ;;  %v2706_v61 = vpop.f32.mrb[67].mxu1  ;;  %v1625_v30 = vpop.f32.mrb[67].mxu0 }
 0x186   : > { %v2440_v0 = vpack.c.bf16 %v1875_v13, %v1874_v43  ;;  %v1807_v47 = vmul.f32 %v3448_v59, %v1623_v53  ;;  %v2707_v29 = vadd.f32 %v2706_v61, %v2705_v52  ;;  %v1626_v37 = vadd.f32 %v1625_v30, %v3470_v3 }
 0x187   : > { %2493 = vst [vmem:[%s3482_s9 + $0x38] sm:$0xff] %v2445_v54   ;;  %v1848_v63 = vadd.f32 %v3454_v5, %v1809_v55  ;;  %v1810_v24 = vmul.f32 %v3448_v59, %v1634_v42  ;;  %v1494_v38 = vadd.f32 %v2704_v50, %v3381_v56 }
 0x188   : > { %2492 = vst [vmem:[%s3482_s9 + $0x30] sm:$0xff] %v2440_v0   ;;  %v1846_v11 = vadd.f32 %v3454_v5, %v1807_v47  ;;  %v1808_v15 = vmul.f32 %v3448_v59, %v1626_v37  ;;  %v1497_v7 = vadd.f32 %v2707_v29, %v3383_v62 }
 0x189   : > { %v1849_v20 = vadd.f32 %v3454_v5, %v1810_v24  ;;  %v1880_v14 = vmax.f32 %v1848_v63, 0.0 }
 0x18a   : > { %v1847_v8 = vadd.f32 %v3454_v5, %v1808_v15  ;;  %v2708_v39 = vpop.f32.mrb[68].mxu1  ;;  %v2776_v3 = vpop.f32.mrb[68].mxu0  ;;  %v1878_v56 = vmax.f32 %v1846_v11, 0.0 }
 0x18b   : > { %v1881_v32 = vmax.f32 %v1849_v20, 0.0  ;;  %v1647_v21 = vadd.f32 %v2776_v3, %v1486_v49  ;;  %v2709_v2 = vpop.f32.mrb[69].mxu1  ;;  %v1638_v17 = vpop.f32.mrb[69].mxu0 }
 0x18c   : > { %v1879_v6 = vmax.f32 %v1847_v8, 0.0  ;;  %v2710_v48 = vadd.f32 %v2709_v2, %v2708_v39  ;;  %v1639_v25 = vadd.f32 %v1638_v17, %v3508_v19  ;;  %v2711_v26 = vpop.f32.mrb[70].mxu1  ;;  %v2777_v62 = vpop.f32.mrb[70].mxu0 }
 0x18d   : > { %v2455_v35 = vpack.c.bf16 %v1881_v32, %v1880_v14  ;;  %v1813_v58 = vmul.f32 %v3448_v59, %v1647_v21  ;;  %v1650_v27 = vadd.f32 %v2777_v62, %v1489_v45  ;;  %v2712_v31 = vpop.f32.mrb[71].mxu1  ;;  %v1641_v33 = vpop.f32.mrb[71].mxu0 }
 0x18e   : > { %v2450_v1 = vpack.c.bf16 %v1879_v6, %v1878_v56  ;;  %v1811_v49 = vmul.f32 %v3448_v59, %v1639_v25  ;;  %v2713_v12 = vadd.f32 %v2712_v31, %v2711_v26  ;;  %v1642_v9 = vadd.f32 %v1641_v33, %v3514_v60 }
 0x18f   : > { %2495 = vst [vmem:[%s3482_s9 + $0x48] sm:$0xff] %v2455_v35   ;;  %v1852_v36 = vadd.f32 %v3454_v5, %v1813_v58  ;;  %v1814_v19 = vmul.f32 %v3448_v59, %v1650_v27  ;;  %v1502_v18 = vadd.f32 %v2710_v48, %v3385_v4 }
 0x190   : > { %2494 = vst [vmem:[%s3482_s9 + $0x40] sm:$0xff] %v2450_v1   ;;  %v1850_v57 = vadd.f32 %v3454_v5, %v1811_v49  ;;  %v1812_v45 = vmul.f32 %v3448_v59, %v1642_v9  ;;  %v1505_v40 = vadd.f32 %v2713_v12, %v3387_v10 }
 0x191   : > { %v1853_v23 = vadd.f32 %v3454_v5, %v1814_v19  ;;  %v1884_v46 = vmax.f32 %v1852_v36, 0.0 }
 0x192   : > { %v1851_v41 = vadd.f32 %v3454_v5, %v1812_v45  ;;  %v2714_v44 = vpop.f32.mrb[72].mxu1  ;;  %v2780_v60 = vpop.f32.mrb[72].mxu0  ;;  %v1882_v4 = vmax.f32 %v1850_v57, 0.0 }
 0x193   : > { %v1885_v43 = vmax.f32 %v1853_v23, 0.0  ;;  %v1663_v13 = vadd.f32 %v2780_v60, %v1502_v18  ;;  %v2715_v50 = vpop.f32.mrb[73].mxu1  ;;  %v1654_v53 = vpop.f32.mrb[73].mxu0 }
 0x194   : > { %v1883_v52 = vmax.f32 %v1851_v41, 0.0  ;;  %v2716_v51 = vadd.f32 %v2715_v50, %v2714_v44  ;;  %v1655_v54 = vadd.f32 %v1654_v53, %v1494_v38  ;;  %v2717_v55 = vpop.f32.mrb[74].mxu1  ;;  %v2781_v42 = vpop.f32.mrb[74].mxu0 }
 0x195   : > { %v2465_v10 = vpack.c.bf16 %v1885_v43, %v1884_v46  ;;  %v1817_v61 = vmul.f32 %v3448_v59, %v1663_v13  ;;  %v1666_v30 = vadd.f32 %v2781_v42, %v1505_v40  ;;  %v2718_v0 = vpop.f32.mrb[75].mxu1  ;;  %v1657_v47 = vpop.f32.mrb[75].mxu0 }
 0x196   : > { %v2460_v29 = vpack.c.bf16 %v1883_v52, %v1882_v4  ;;  %v1815_v37 = vmul.f32 %v3448_v59, %v1655_v54  ;;  %v2719_v63 = vadd.f32 %v2718_v0, %v2717_v55  ;;  %v1658_v24 = vadd.f32 %v1657_v47, %v1497_v7 }
 0x197   : > { %2497 = vst [vmem:[%s3482_s9 + $0x58] sm:$0xff] %v2465_v10   ;;  %v1856_v11 = vadd.f32 %v3454_v5, %v1817_v61  ;;  %v1818_v15 = vmul.f32 %v3448_v59, %v1666_v30  ;;  %v1510_v38 = vadd.f32 %v2716_v51, %v3389_v16 }
 0x198   : > { %2496 = vst [vmem:[%s3482_s9 + $0x50] sm:$0xff] %v2460_v29   ;;  %v1854_v20 = vadd.f32 %v3454_v5, %v1815_v37  ;;  %v1816_v8 = vmul.f32 %v3448_v59, %v1658_v24  ;;  %v1513_v39 = vadd.f32 %v2719_v63, %v3391_v22 }
 0x199   : > { %v1857_v3 = vadd.f32 %v3454_v5, %v1818_v15  ;;  %v1888_v21 = vmax.f32 %v1856_v11, 0.0 }
 0x19a   : > { %v1855_v14 = vadd.f32 %v3454_v5, %v1816_v8  ;;  %v2720_v32 = vpop.f32.mrb[76].mxu1  ;;  %v2784_v7 = vpop.f32.mrb[76].mxu0  ;;  %v1886_v16 = vmax.f32 %v1854_v20, 0.0 }
 0x19b   : > { %v1889_v2 = vmax.f32 %v1857_v3, 0.0  ;;  %v2721_v17 = vpop.f32.mrb[77].mxu1  ;;  %v1670_v56 = vpop.f32.mrb[77].mxu0 }
 0x19c   : > { %v1887_v6 = vmax.f32 %v1855_v14, 0.0  ;;  %v2722_v48 = vadd.f32 %v2721_v17, %v2720_v32  ;;  %v1671_v25 = vadd.f32 %v1670_v56, %v1510_v38  ;;  %v2723_v26 = vpop.f32.mrb[78].mxu1  ;;  %v2785_v62 = vpop.f32.mrb[78].mxu0 }
 0x19d   : > { %v2475_v35 = vpack.c.bf16 %v1889_v2, %v1888_v21  ;;  %v2724_v22 = vpop.f32.mrb[79].mxu1  ;;  %v1673_v58 = vpop.f32.mrb[79].mxu0 }
 0x19e   : > { %v2470_v27 = vpack.c.bf16 %v1887_v6, %v1886_v16  ;;  %v1518_v31 = vadd.f32 %v2722_v48, %v3393_v28  ;;  %v1819_v33 = vmul.f32 %v3448_v59, %v1671_v25  ;;  %v2725_v1 = vadd.f32 %v2724_v22, %v2723_v26 }
 0x19f   : > { %2499 = vst [vmem:[%s3482_s9 + $0x68] sm:$0xff] %v2475_v35   ;;  %v1674_v49 = vadd.f32 %v1673_v58, %v1513_v39 }
 0x1a0   : > { %2498 = vst [vmem:[%s3482_s9 + $0x60] sm:$0xff] %v2470_v27   ;;  %v1679_v12 = vadd.f32 %v2784_v7, %v1518_v31  ;;  %v1521_v9 = vadd.f32 %v2725_v1, %v3395_v34  ;;  %v1858_v36 = vadd.f32 %v3454_v5, %v1819_v33 }
 0x1a1   : > { %v1820_v19 = vmul.f32 %v3448_v59, %v1674_v49 }
 0x1a2   : > { %v1821_v18 = vmul.f32 %v3448_v59, %v1679_v12  ;;  %v1682_v57 = vadd.f32 %v2785_v62, %v1521_v9  ;;  %v1890_v23 = vmax.f32 %v1858_v36, 0.0 }
 0x1a3   : > { %v1859_v28 = vadd.f32 %v3454_v5, %v1820_v19 }
 0x1a4   : > { %v1860_v45 = vadd.f32 %v3454_v5, %v1821_v18  ;;  %v1822_v40 = vmul.f32 %v3448_v59, %v1682_v57 }
 0x1a5   : > { %v1891_v41 = vmax.f32 %v1859_v28, 0.0 }
 0x1a6   : > { %v1861_v34 = vadd.f32 %v3454_v5, %v1822_v40  ;;  %v1892_v60 = vmax.f32 %v1860_v45, 0.0 }
 0x1a7   : > { %v2480_v44 = vpack.c.bf16 %v1891_v41, %v1890_v23 }
 0x1a8   : > { %v1893_v46 = vmax.f32 %v1861_v34, 0.0 }
 0x1a9   : > { %2500 = vst [vmem:[%s3482_s9 + $0x70] sm:$0xff] %v2480_v44  }
 0x1aa   : > { %v2485_v59 = vpack.c.bf16 %v1893_v46, %v1892_v60 }
 0x1ac   : > { %2501 = vst [vmem:[%s3482_s9 + $0x78] sm:$0xff] %v2485_v59  }
 0x1ad   : > { %3021 = shalt.err (!%p3018_p5)
}
 0x1ae   : > { %s3022_s10 = scalar_lea.hbm %s3594_s14, 2048  ;;  %s3026_s6 = scalar_lea.hbm %s3651_s4, 4096 }
 0x1af   : > { %p3023_p6 = scmp.ne.s32.totalorder %s3594_s14, %s3022_s10  ;;  %p3027_p10 = scmp.lt.u32.totalorder %s3594_s14, %s3651_s4 }
 0x1b0   : > { %p3028_p11 = scmp.lt.u32.totalorder %s3026_s6, %s3022_s10  ;;  %p3030_p13 = scmp.lt.u32.totalorder %s3022_s10, %s3594_s14 }
 0x1b1   : > { %p3024_p7 = pnand %p3023_p6, %p3156_p4 }
 0x1b2   : > { %p3029_p12 = por %p3028_p11, %p3027_p10 }
 0x1b3   : > { %p3025_p9 = pneg %p3024_p7 }
 0x1b4   : > { %p3031_p0 = por %p3030_p13, %p3029_p12 }
 0x1b6   : > { %p3032_p1 = pnand %p3031_p0, %p3025_p9 }
 0x1b8   : > { %3035 = shalt.err (!%p3032_p1)
}
 0x1b9   : > { %s3089_s9 = smov 64   ;;  %s3090_s5 = smov 4  }
 0x1ba   : > { %2803 = dma.vmem_to_hbm [thread:$0]  (%p3156_p4), %s3596_s11, 2048, %s3594_s14, %s3601_s21, %s3089_s9, %s3089_s9, %s3090_s5  }
 0x1bb PF: > { %p2809_p2 = scmp.ge.s32.totalorder %s3086_s20, 2  ;;  %s2084_s12 = sand.u32 1, %s3066_s15  }
 0x1bc   : > { %s2085_s13 = scalar_lea.sflag [#allocation4], %s2084_s12 }
 0x1bd   : > { %p2806_p3 = pnand %p2809_p2, %p3163_p8 }
 0x1bf   : > { %3061 = dma.done.wait (!%p2806_p3), %s2085_s13, 2048  }
 0x1c0   : > { %3063 = vsyncadd (!%p2806_p3), %s2085_s13, 4294965248  ;;  %s17_s20 = sadd.s32 1, %s3086_s20   ;;  %s3654_s15 = smov %s3070_s16 }
 0x1c1   : > { %p14_p5 = scmp.ge.s32.totalorder %s17_s20, 4   ;;  %s3655_s16 = smov %s3074_s17 }
 0x1c2   : > { %s3656_s17 = smov %s3169_s28  ;;  %s3657_s18 = smov %s3082_s19 }
 0x1c3   : > { %s3658_s19 = smov %s3660_s23  ;;  %16 = sbr.rel (!%p14_p5) target bundleno = 4 (0x4), region = 88 }
 0x1ca   :  { %2090 = vsyncpa [#allocation4], 1 }
 0x1cb   :  { %2092 = vsyncpa [#allocation4 + $0x1], 1 }

</bundles_post_ra>
